<compile_context>
chip_gen: v7x
topology: tpu7x:2x2x1
jax: 0.10.0
libtpu: 0.0.40
codegen_flags: <defaults>
</compile_context>

<pallas_src>
import math

import jax
import jax.numpy as jnp
import numpy as np
from jax.experimental import pallas as pl
from jax.experimental.pallas import tpu as pltpu


def _temporal_lstm_kernel(hwa_ref, va_ref, hwg_ref, wrec_ref, b_ref,
                          fcw_ref, fcb_ref, y_ref, hseq_ref):
    S = hwa_ref.shape[0]           # seq_len (number of time steps)
    B = hwg_ref.shape[0]           # batch
    HS = hwg_ref.shape[2] // 4     # hidden_dim
    Tp = hwa_ref.shape[3]          # padded temp_node (lane-dense 128)

    hwg = hwg_ref[...]             # (B, S, 4*HS)   precomputed H @ W
    bias = b_ref[...]              # (1, 4*HS)

    h_prev = jnp.zeros((B, HS), jnp.float32)
    c_prev = jnp.zeros((B, HS), jnp.float32)
    h_steps = []

    # Statically unrolled recurrence (S=8 here; use lax.fori_loop for large S).
    for t in range(S):
        hwa_t = hwa_ref[t]         # (B, S, Tp)  = H @ Wa[:, t] + ba[t]
        va_t = va_ref[t]           # (1, Tp)     already scaled by 1/sqrt(HS)

        # --- Single fused recurrent matmul on the serial critical path:
        # [c, h] @ [[Ua_t, 0], [0, U]]  -> [c@Ua_t | h@U], bf16 single-pass MXU.
        state = jnp.concatenate([c_prev, h_prev], axis=1).astype(jnp.bfloat16)
        rec = jnp.dot(state, wrec_ref[t], preferred_element_type=jnp.float32)
        cu = rec[:, :Tp]           # (B, Tp)    = c_prev @ Ua_t
        hu = rec[:, Tp:]           # (B, 4*HS)  = h_prev @ U

        # --- temporal attention over the sequence (state-dependent half) ---
        z = jnp.tanh(hwa_t + cu[:, None, :])                 # (B, S, Tp)
        scores = jnp.sum(z * va_t[None, :, :], axis=-1)      # (B, S)
        scores = scores - jnp.max(scores, axis=1, keepdims=True)
        e = jnp.exp(scores)
        beta = e / jnp.sum(e, axis=1, keepdims=True)         # exact softmax

        # --- LSTM cell.  h_t @ W == sum_s beta * (H @ W) by linearity.
        # (S=8: the VPU sublane reduce is cheap; route to MXU for large S.)
        gates = jnp.sum(beta[:, :, None] * hwg, axis=1) + hu + bias   # (B, 4*HS)
        sg = jax.nn.sigmoid(gates)     # one full-vreg EUP pass
        tg = jnp.tanh(gates)           # one full-vreg EUP pass
        i_t = sg[:, :HS]
        f_t = sg[:, HS:2 * HS]
        g_t = tg[:, 2 * HS:3 * HS]
        o_t = sg[:, 3 * HS:]
        c_prev = f_t * c_prev + i_t * g_t
        h_prev = o_t * jnp.tanh(c_prev)
        h_steps.append(h_prev)

    # One bulk lane-dense store of the whole hidden sequence (B, S*HS).
    hseq_ref[...] = jnp.concatenate(h_steps, axis=1)
    # fc only matters for the final step ("last write wins" in the reference).
    y_ref[...] = (jnp.dot(h_prev, fcw_ref[...], preferred_element_type=jnp.float32)
                  + fcb_ref[...])


@jax.jit
def temporal_lstm_forward(H, params):
    B, S, D = H.shape
    HS = params['U'].shape[0]
    T = params['Wa'].shape[2]
    OUT = params['fc_w'].shape[1]
    Tp = ((T + 127) // 128) * 128          # pad temp_node to a lane-dense 128

    f32 = jnp.float32
    H = H.astype(f32)
    Wa = jnp.pad(params['Wa'].astype(f32), ((0, 0), (0, 0), (0, Tp - T)))
    Ua = jnp.pad(params['Ua'].astype(f32), ((0, 0), (0, 0), (0, Tp - T)))
    ba = jnp.pad(params['ba'].astype(f32), ((0, 0), (0, Tp - T)))
    Va = jnp.pad(params['Va'].astype(f32), ((0, Tp - T), (0, 0), (0, 0)))

    # Hoisted state-independent attention pre-activation (one batched matmul):
    # HWa[t, b, s, :] = H[b, s, :] @ Wa[:, t, :] + ba[t, :]
    HWa = jnp.einsum('bsd,dut->ubst', H, Wa) + ba[:, None, None, :]   # (S,B,S,Tp)
    Va3 = jnp.transpose(Va, (1, 2, 0)) * (1.0 / math.sqrt(HS))        # (S,1,Tp)
    # Hoisted H @ W (gates are linear in h_t): (B, S, 4*HS)
    HWg = jnp.einsum('bsd,dg->bsg', H, params['W'].astype(f32))

    # Fused per-step recurrent weight: block-diag [[Ua_t, 0], [0, U]],
    # shape (S, 2*HS, Tp + 4*HS), stored bf16 for single-pass MXU.
    Ua3 = jnp.transpose(Ua, (1, 0, 2))                                # (S,HS,Tp)
    U = params['U'].astype(f32)                                       # (HS,4*HS)
    Wrec = jnp.zeros((S, 2 * HS, Tp + 4 * HS), f32)
    Wrec = Wrec.at[:, :HS, :Tp].set(Ua3)
    Wrec = Wrec.at[:, HS:, Tp:].set(U[None])
    Wrec = Wrec.astype(jnp.bfloat16)

    bias2 = params['bias'].astype(f32)[None, :]                       # (1,4*HS)
    fcw = params['fc_w'].astype(f32)                                  # (HS,OUT)
    fcb2 = params['fc_b'].astype(f32)[None, :]                        # (1,OUT)

    operands = (HWa, Va3, HWg, Wrec, bias2, fcw, fcb2)
    out_shapes = (jax.ShapeDtypeStruct((B, OUT), f32),
                  jax.ShapeDtypeStruct((B, S * HS), f32))

    # VMEM limit sized from the actual resident buffers (gridless design keeps
    # everything resident) plus headroom; never below the 32 MiB default and
    # capped at v7x's 64 MiB physical VMEM.
    resident = sum(int(np.prod(o.shape)) * jnp.dtype(o.dtype).itemsize
                   for o in operands + out_shapes)
    vmem_limit = int(min(max(2 * resident + (8 << 20), 32 << 20), 64 << 20))

    vmem = pl.BlockSpec(memory_space=pltpu.MemorySpace.VMEM)
    y, hseq_flat = pl.pallas_call(
        _temporal_lstm_kernel,
        out_shape=out_shapes,
        in_specs=[vmem] * len(operands),
        out_specs=(vmem, vmem),
        compiler_params=pltpu.CompilerParams(vmem_limit_bytes=vmem_limit),
    )(*operands)
    return y, hseq_flat.reshape(B, S, HS)


def temporal_lstm_reference(H, params):
    """Plain-JAX reference mirroring the PyTorch forward exactly."""
    B, S, D = H.shape
    HS = params['U'].shape[0]
    h_prev = jnp.zeros((B, HS), jnp.float32)
    c_t = jnp.zeros((B, HS), jnp.float32)
    hs, y = [], None
    for t in range(S):
        z = jnp.tanh(H @ params['Wa'][:, t]
                     + (c_t @ params['Ua'][:, t])[:, None, :]
                     + params['ba'][t])
        beta = (z @ params['Va'][:, t])[..., 0]
        beta = jax.nn.softmax(beta / math.sqrt(HS), axis=1)
        h_t = jnp.sum(beta[:, :, None] * H, axis=1)
        gates = h_t @ params['W'] + h_prev @ params['U'] + params['bias']
        i_t = jax.nn.sigmoid(gates[:, :HS])
        f_t = jax.nn.sigmoid(gates[:, HS:2 * HS])
        g_t = jnp.tanh(gates[:, 2 * HS:3 * HS])
        o_t = jax.nn.sigmoid(gates[:, 3 * HS:])
        c_t = f_t * c_t + i_t * g_t
        h_prev = o_t * jnp.tanh(c_t)
        hs.append(h_prev)
        y = h_prev @ params['fc_w'] + params['fc_b']
    return y, jnp.stack(hs, axis=1)


if __name__ == "__main__":
    # Small shapes consistent with the module's forward.
    B, S, D, HS, OUT, T = 2, 8, 4, 32, 2, 100

    key = jax.random.PRNGKey(0)
    keys = jax.random.split(key, 10)
    stdv = 1.0 / math.sqrt(HS)   # init_weights: every parameter ~ N(0, stdv)
    params = {
        'Wa':   jax.random.normal(keys[0], (D, S, T), jnp.float32) * stdv,
        'Ua':   jax.random.normal(keys[1], (HS, S, T), jnp.float32) * stdv,
        'ba':   jax.random.normal(keys[2], (S, T), jnp.float32) * stdv,
        'Va':   jax.random.normal(keys[3], (T, S, 1), jnp.float32) * stdv,
        'W':    jax.random.normal(keys[4], (D, 4 * HS), jnp.float32) * stdv,
        'U':    jax.random.normal(keys[5], (HS, 4 * HS), jnp.float32) * stdv,
        'bias': jax.random.normal(keys[6], (4 * HS,), jnp.float32) * stdv,
        'fc_w': jax.random.normal(keys[7], (HS, OUT), jnp.float32) * stdv,  # (in, out)
        'fc_b': jax.random.normal(keys[8], (OUT,), jnp.float32) * stdv,
    }
    H = jax.random.normal(keys[9], (B, S, D), jnp.float32)

    y, hidden_seq = jax.block_until_ready(temporal_lstm_forward(H, params))

    y_exp, hseq_exp = temporal_lstm_reference(H, params)
    assert y.shape == (B, OUT) and hidden_seq.shape == (B, S, HS)
    # 2e-3 tolerance absorbs the bf16 single-pass MXU on the fused recurrent
    # matmul (softmax now uses an exact divide; everything else is f32).
    assert np.allclose(np.asarray(y), np.asarray(y_exp), rtol=2e-3, atol=2e-3)
    assert np.allclose(np.asarray(hidden_seq), np.asarray(hseq_exp),
                       rtol=2e-3, atol=2e-3)
    print("KERNEL_OK")
</pallas_src>

<mosaic_0001>
module attributes {stable_mosaic.version = 11 : i64} {
  func.func @_temporal_lstm_kernel(%arg0: memref<8x2x8x128xf32, #tpu.memory_space<vmem>>, %arg1: memref<8x1x128xf32, #tpu.memory_space<vmem>>, %arg2: memref<2x8x128xf32, #tpu.memory_space<vmem>>, %arg3: memref<8x64x256xbf16, #tpu.memory_space<vmem>>, %arg4: memref<1x128xf32, #tpu.memory_space<vmem>>, %arg5: memref<32x2xf32, #tpu.memory_space<vmem>>, %arg6: memref<1x2xf32, #tpu.memory_space<vmem>>, %arg7: memref<2x2xf32, #tpu.memory_space<vmem>>, %arg8: memref<2x256xf32, #tpu.memory_space<vmem>>) attributes {dimension_semantics = [], scalar_prefetch = 0 : i64, scratch_operands = 0 : i64, tpu.core_type = #tpu.core_type<tc>} {
    %c0 = arith.constant 0 : index
    %c0_0 = arith.constant 0 : index
    %c0_1 = arith.constant 0 : index
    %0 = vector.load %arg2[%c0, %c0_0, %c0_1] : memref<2x8x128xf32, #tpu.memory_space<vmem>>, vector<2x8x128xf32>
    %c0_2 = arith.constant 0 : index
    %c0_3 = arith.constant 0 : index
    %1 = vector.load %arg4[%c0_2, %c0_3] : memref<1x128xf32, #tpu.memory_space<vmem>>, vector<1x128xf32>
    %cst = arith.constant 0.000000e+00 : f32
    %2 = vector.broadcast %cst : f32 to vector<2x32xf32>
    %cst_4 = arith.constant 0.000000e+00 : f32
    %3 = vector.broadcast %cst_4 : f32 to vector<2x32xf32>
    %c0_5 = arith.constant 0 : index
    %c0_6 = arith.constant 0 : index
    %c0_7 = arith.constant 0 : index
    %c0_8 = arith.constant 0 : index
    %4 = vector.load %arg0[%c0_5, %c0_6, %c0_7, %c0_8] : memref<8x2x8x128xf32, #tpu.memory_space<vmem>>, vector<1x2x8x128xf32>
    %5 = vector.shape_cast %4 : vector<1x2x8x128xf32> to vector<2x8x128xf32>
    %c0_9 = arith.constant 0 : index
    %c0_10 = arith.constant 0 : index
    %c0_11 = arith.constant 0 : index
    %6 = vector.load %arg1[%c0_9, %c0_10, %c0_11] : memref<8x1x128xf32, #tpu.memory_space<vmem>>, vector<1x1x128xf32>
    %7 = vector.shape_cast %6 : vector<1x1x128xf32> to vector<1x128xf32>
    %8 = tpu.concatenate %3, %2 in 1 : vector<2x32xf32>, vector<2x32xf32> -> vector<2x64xf32>
    %9 = arith.truncf %8 : vector<2x64xf32> to vector<2x64xbf16>
    %c0_12 = arith.constant 0 : index
    %c0_13 = arith.constant 0 : index
    %c0_14 = arith.constant 0 : index
    %10 = vector.load %arg3[%c0_12, %c0_13, %c0_14] : memref<8x64x256xbf16, #tpu.memory_space<vmem>>, vector<1x64x256xbf16>
    %11 = vector.shape_cast %10 : vector<1x64x256xbf16> to vector<64x256xbf16>
    %cst_15 = arith.constant dense<0.000000e+00> : vector<2x256xf32>
    %12 = tpu.matmul %9, %11, %cst_15 {dimension_numbers = #tpu.dot_dimension_numbers<[1], [0], [0], [1], [0, 0, 1, 1], [], []>} : vector<2x64xbf16>, vector<64x256xbf16>, vector<2x256xf32> -> vector<2x256xf32>
    %13 = vector.extract_strided_slice %12 {offsets = [0, 0], sizes = [2, 128], strides = [1, 1]} : vector<2x256xf32> to vector<2x128xf32>
    %14 = vector.extract_strided_slice %12 {offsets = [0, 128], sizes = [2, 128], strides = [1, 1]} : vector<2x256xf32> to vector<2x128xf32>
    %15 = vector.shape_cast %13 : vector<2x128xf32> to vector<2x1x128xf32>
    %16 = vector.broadcast %15 : vector<2x1x128xf32> to vector<2x8x128xf32>
    %17 = arith.addf %5, %16 : vector<2x8x128xf32>
    %18 = math.tanh %17 : vector<2x8x128xf32>
    %19 = vector.shape_cast %7 : vector<1x128xf32> to vector<1x1x128xf32>
    %20 = vector.broadcast %19 : vector<1x1x128xf32> to vector<2x8x128xf32>
    %21 = arith.mulf %18, %20 : vector<2x8x128xf32>
    %cst_16 = arith.constant dense<0.000000e+00> : vector<2x8xf32>
    %22 = vector.multi_reduction <add>, %21, %cst_16 [2] : vector<2x8x128xf32> to vector<2x8xf32>
    %cst_17 = arith.constant dense<0xFF800000> : vector<2xf32>
    %23 = vector.multi_reduction <maximumf>, %22, %cst_17 [1] : vector<2x8xf32> to vector<2xf32>
    %24 = vector.shape_cast %23 : vector<2xf32> to vector<2x1xf32>
    %25 = vector.broadcast %24 : vector<2x1xf32> to vector<2x8xf32>
    %26 = arith.subf %22, %25 : vector<2x8xf32>
    %27 = math.exp %26 : vector<2x8xf32>
    %cst_18 = arith.constant dense<0.000000e+00> : vector<2xf32>
    %28 = vector.multi_reduction <add>, %27, %cst_18 [1] : vector<2x8xf32> to vector<2xf32>
    %29 = vector.shape_cast %28 : vector<2xf32> to vector<2x1xf32>
    %30 = vector.broadcast %29 : vector<2x1xf32> to vector<2x8xf32>
    %31 = arith.divf %27, %30 : vector<2x8xf32>
    %32 = vector.shape_cast %31 : vector<2x8xf32> to vector<2x8x1xf32>
    %33 = vector.broadcast %32 : vector<2x8x1xf32> to vector<2x8x128xf32>
    %34 = arith.mulf %33, %0 : vector<2x8x128xf32>
    %cst_19 = arith.constant dense<0.000000e+00> : vector<2x128xf32>
    %35 = vector.multi_reduction <add>, %34, %cst_19 [1] : vector<2x8x128xf32> to vector<2x128xf32>
    %36 = arith.addf %35, %14 : vector<2x128xf32>
    %37 = vector.broadcast %1 : vector<1x128xf32> to vector<2x128xf32>
    %38 = arith.addf %36, %37 : vector<2x128xf32>
    %39 = arith.negf %38 : vector<2x128xf32>
    %40 = math.exp %39 : vector<2x128xf32>
    %cst_20 = arith.constant 1.000000e+00 : f32
    %41 = vector.broadcast %cst_20 : f32 to vector<2x128xf32>
    %42 = arith.addf %41, %40 : vector<2x128xf32>
    %43 = arith.divf %41, %42 : vector<2x128xf32>
    %44 = math.tanh %38 : vector<2x128xf32>
    %45 = vector.extract_strided_slice %43 {offsets = [0, 0], sizes = [2, 32], strides = [1, 1]} : vector<2x128xf32> to vector<2x32xf32>
    %46 = vector.extract_strided_slice %43 {offsets = [0, 32], sizes = [2, 32], strides = [1, 1]} : vector<2x128xf32> to vector<2x32xf32>
    %47 = vector.extract_strided_slice %44 {offsets = [0, 64], sizes = [2, 32], strides = [1, 1]} : vector<2x128xf32> to vector<2x32xf32>
    %48 = vector.extract_strided_slice %43 {offsets = [0, 96], sizes = [2, 32], strides = [1, 1]} : vector<2x128xf32> to vector<2x32xf32>
    %49 = arith.mulf %46, %3 : vector<2x32xf32>
    %50 = arith.mulf %45, %47 : vector<2x32xf32>
    %51 = arith.addf %49, %50 : vector<2x32xf32>
    %52 = math.tanh %51 : vector<2x32xf32>
    %53 = arith.mulf %48, %52 : vector<2x32xf32>
    %c1 = arith.constant 1 : index
    %c0_21 = arith.constant 0 : index
    %c0_22 = arith.constant 0 : index
    %c0_23 = arith.constant 0 : index
    %54 = vector.load %arg0[%c1, %c0_21, %c0_22, %c0_23] : memref<8x2x8x128xf32, #tpu.memory_space<vmem>>, vector<1x2x8x128xf32>
    %55 = vector.shape_cast %54 : vector<1x2x8x128xf32> to vector<2x8x128xf32>
    %c1_24 = arith.constant 1 : index
    %c0_25 = arith.constant 0 : index
    %c0_26 = arith.constant 0 : index
    %56 = vector.load %arg1[%c1_24, %c0_25, %c0_26] : memref<8x1x128xf32, #tpu.memory_space<vmem>>, vector<1x1x128xf32>
    %57 = vector.shape_cast %56 : vector<1x1x128xf32> to vector<1x128xf32>
    %58 = tpu.concatenate %51, %53 in 1 : vector<2x32xf32>, vector<2x32xf32> -> vector<2x64xf32>
    %59 = arith.truncf %58 : vector<2x64xf32> to vector<2x64xbf16>
    %c1_27 = arith.constant 1 : index
    %c0_28 = arith.constant 0 : index
    %c0_29 = arith.constant 0 : index
    %60 = vector.load %arg3[%c1_27, %c0_28, %c0_29] : memref<8x64x256xbf16, #tpu.memory_space<vmem>>, vector<1x64x256xbf16>
    %61 = vector.shape_cast %60 : vector<1x64x256xbf16> to vector<64x256xbf16>
    %cst_30 = arith.constant dense<0.000000e+00> : vector<2x256xf32>
    %62 = tpu.matmul %59, %61, %cst_30 {dimension_numbers = #tpu.dot_dimension_numbers<[1], [0], [0], [1], [0, 0, 1, 1], [], []>} : vector<2x64xbf16>, vector<64x256xbf16>, vector<2x256xf32> -> vector<2x256xf32>
    %63 = vector.extract_strided_slice %62 {offsets = [0, 0], sizes = [2, 128], strides = [1, 1]} : vector<2x256xf32> to vector<2x128xf32>
    %64 = vector.extract_strided_slice %62 {offsets = [0, 128], sizes = [2, 128], strides = [1, 1]} : vector<2x256xf32> to vector<2x128xf32>
    %65 = vector.shape_cast %63 : vector<2x128xf32> to vector<2x1x128xf32>
    %66 = vector.broadcast %65 : vector<2x1x128xf32> to vector<2x8x128xf32>
    %67 = arith.addf %55, %66 : vector<2x8x128xf32>
    %68 = math.tanh %67 : vector<2x8x128xf32>
    %69 = vector.shape_cast %57 : vector<1x128xf32> to vector<1x1x128xf32>
    %70 = vector.broadcast %69 : vector<1x1x128xf32> to vector<2x8x128xf32>
    %71 = arith.mulf %68, %70 : vector<2x8x128xf32>
    %cst_31 = arith.constant dense<0.000000e+00> : vector<2x8xf32>
    %72 = vector.multi_reduction <add>, %71, %cst_31 [2] : vector<2x8x128xf32> to vector<2x8xf32>
    %cst_32 = arith.constant dense<0xFF800000> : vector<2xf32>
    %73 = vector.multi_reduction <maximumf>, %72, %cst_32 [1] : vector<2x8xf32> to vector<2xf32>
    %74 = vector.shape_cast %73 : vector<2xf32> to vector<2x1xf32>
    %75 = vector.broadcast %74 : vector<2x1xf32> to vector<2x8xf32>
    %76 = arith.subf %72, %75 : vector<2x8xf32>
    %77 = math.exp %76 : vector<2x8xf32>
    %cst_33 = arith.constant dense<0.000000e+00> : vector<2xf32>
    %78 = vector.multi_reduction <add>, %77, %cst_33 [1] : vector<2x8xf32> to vector<2xf32>
    %79 = vector.shape_cast %78 : vector<2xf32> to vector<2x1xf32>
    %80 = vector.broadcast %79 : vector<2x1xf32> to vector<2x8xf32>
    %81 = arith.divf %77, %80 : vector<2x8xf32>
    %82 = vector.shape_cast %81 : vector<2x8xf32> to vector<2x8x1xf32>
    %83 = vector.broadcast %82 : vector<2x8x1xf32> to vector<2x8x128xf32>
    %84 = arith.mulf %83, %0 : vector<2x8x128xf32>
    %cst_34 = arith.constant dense<0.000000e+00> : vector<2x128xf32>
    %85 = vector.multi_reduction <add>, %84, %cst_34 [1] : vector<2x8x128xf32> to vector<2x128xf32>
    %86 = arith.addf %85, %64 : vector<2x128xf32>
    %87 = vector.broadcast %1 : vector<1x128xf32> to vector<2x128xf32>
    %88 = arith.addf %86, %87 : vector<2x128xf32>
    %89 = arith.negf %88 : vector<2x128xf32>
    %90 = math.exp %89 : vector<2x128xf32>
    %cst_35 = arith.constant 1.000000e+00 : f32
    %91 = vector.broadcast %cst_35 : f32 to vector<2x128xf32>
    %92 = arith.addf %91, %90 : vector<2x128xf32>
    %93 = arith.divf %91, %92 : vector<2x128xf32>
    %94 = math.tanh %88 : vector<2x128xf32>
    %95 = vector.extract_strided_slice %93 {offsets = [0, 0], sizes = [2, 32], strides = [1, 1]} : vector<2x128xf32> to vector<2x32xf32>
    %96 = vector.extract_strided_slice %93 {offsets = [0, 32], sizes = [2, 32], strides = [1, 1]} : vector<2x128xf32> to vector<2x32xf32>
    %97 = vector.extract_strided_slice %94 {offsets = [0, 64], sizes = [2, 32], strides = [1, 1]} : vector<2x128xf32> to vector<2x32xf32>
    %98 = vector.extract_strided_slice %93 {offsets = [0, 96], sizes = [2, 32], strides = [1, 1]} : vector<2x128xf32> to vector<2x32xf32>
    %99 = arith.mulf %96, %51 : vector<2x32xf32>
    %100 = arith.mulf %95, %97 : vector<2x32xf32>
    %101 = arith.addf %99, %100 : vector<2x32xf32>
    %102 = math.tanh %101 : vector<2x32xf32>
    %103 = arith.mulf %98, %102 : vector<2x32xf32>
    %c2 = arith.constant 2 : index
    %c0_36 = arith.constant 0 : index
    %c0_37 = arith.constant 0 : index
    %c0_38 = arith.constant 0 : index
    %104 = vector.load %arg0[%c2, %c0_36, %c0_37, %c0_38] : memref<8x2x8x128xf32, #tpu.memory_space<vmem>>, vector<1x2x8x128xf32>
    %105 = vector.shape_cast %104 : vector<1x2x8x128xf32> to vector<2x8x128xf32>
    %c2_39 = arith.constant 2 : index
    %c0_40 = arith.constant 0 : index
    %c0_41 = arith.constant 0 : index
    %106 = vector.load %arg1[%c2_39, %c0_40, %c0_41] : memref<8x1x128xf32, #tpu.memory_space<vmem>>, vector<1x1x128xf32>
    %107 = vector.shape_cast %106 : vector<1x1x128xf32> to vector<1x128xf32>
    %108 = tpu.concatenate %101, %103 in 1 : vector<2x32xf32>, vector<2x32xf32> -> vector<2x64xf32>
    %109 = arith.truncf %108 : vector<2x64xf32> to vector<2x64xbf16>
    %c2_42 = arith.constant 2 : index
    %c0_43 = arith.constant 0 : index
    %c0_44 = arith.constant 0 : index
    %110 = vector.load %arg3[%c2_42, %c0_43, %c0_44] : memref<8x64x256xbf16, #tpu.memory_space<vmem>>, vector<1x64x256xbf16>
    %111 = vector.shape_cast %110 : vector<1x64x256xbf16> to vector<64x256xbf16>
    %cst_45 = arith.constant dense<0.000000e+00> : vector<2x256xf32>
    %112 = tpu.matmul %109, %111, %cst_45 {dimension_numbers = #tpu.dot_dimension_numbers<[1], [0], [0], [1], [0, 0, 1, 1], [], []>} : vector<2x64xbf16>, vector<64x256xbf16>, vector<2x256xf32> -> vector<2x256xf32>
    %113 = vector.extract_strided_slice %112 {offsets = [0, 0], sizes = [2, 128], strides = [1, 1]} : vector<2x256xf32> to vector<2x128xf32>
    %114 = vector.extract_strided_slice %112 {offsets = [0, 128], sizes = [2, 128], strides = [1, 1]} : vector<2x256xf32> to vector<2x128xf32>
    %115 = vector.shape_cast %113 : vector<2x128xf32> to vector<2x1x128xf32>
    %116 = vector.broadcast %115 : vector<2x1x128xf32> to vector<2x8x128xf32>
    %117 = arith.addf %105, %116 : vector<2x8x128xf32>
    %118 = math.tanh %117 : vector<2x8x128xf32>
    %119 = vector.shape_cast %107 : vector<1x128xf32> to vector<1x1x128xf32>
    %120 = vector.broadcast %119 : vector<1x1x128xf32> to vector<2x8x128xf32>
    %121 = arith.mulf %118, %120 : vector<2x8x128xf32>
    %cst_46 = arith.constant dense<0.000000e+00> : vector<2x8xf32>
    %122 = vector.multi_reduction <add>, %121, %cst_46 [2] : vector<2x8x128xf32> to vector<2x8xf32>
    %cst_47 = arith.constant dense<0xFF800000> : vector<2xf32>
    %123 = vector.multi_reduction <maximumf>, %122, %cst_47 [1] : vector<2x8xf32> to vector<2xf32>
    %124 = vector.shape_cast %123 : vector<2xf32> to vector<2x1xf32>
    %125 = vector.broadcast %124 : vector<2x1xf32> to vector<2x8xf32>
    %126 = arith.subf %122, %125 : vector<2x8xf32>
    %127 = math.exp %126 : vector<2x8xf32>
    %cst_48 = arith.constant dense<0.000000e+00> : vector<2xf32>
    %128 = vector.multi_reduction <add>, %127, %cst_48 [1] : vector<2x8xf32> to vector<2xf32>
    %129 = vector.shape_cast %128 : vector<2xf32> to vector<2x1xf32>
    %130 = vector.broadcast %129 : vector<2x1xf32> to vector<2x8xf32>
    %131 = arith.divf %127, %130 : vector<2x8xf32>
    %132 = vector.shape_cast %131 : vector<2x8xf32> to vector<2x8x1xf32>
    %133 = vector.broadcast %132 : vector<2x8x1xf32> to vector<2x8x128xf32>
    %134 = arith.mulf %133, %0 : vector<2x8x128xf32>
    %cst_49 = arith.constant dense<0.000000e+00> : vector<2x128xf32>
    %135 = vector.multi_reduction <add>, %134, %cst_49 [1] : vector<2x8x128xf32> to vector<2x128xf32>
    %136 = arith.addf %135, %114 : vector<2x128xf32>
    %137 = vector.broadcast %1 : vector<1x128xf32> to vector<2x128xf32>
    %138 = arith.addf %136, %137 : vector<2x128xf32>
    %139 = arith.negf %138 : vector<2x128xf32>
    %140 = math.exp %139 : vector<2x128xf32>
    %cst_50 = arith.constant 1.000000e+00 : f32
    %141 = vector.broadcast %cst_50 : f32 to vector<2x128xf32>
    %142 = arith.addf %141, %140 : vector<2x128xf32>
    %143 = arith.divf %141, %142 : vector<2x128xf32>
    %144 = math.tanh %138 : vector<2x128xf32>
    %145 = vector.extract_strided_slice %143 {offsets = [0, 0], sizes = [2, 32], strides = [1, 1]} : vector<2x128xf32> to vector<2x32xf32>
    %146 = vector.extract_strided_slice %143 {offsets = [0, 32], sizes = [2, 32], strides = [1, 1]} : vector<2x128xf32> to vector<2x32xf32>
    %147 = vector.extract_strided_slice %144 {offsets = [0, 64], sizes = [2, 32], strides = [1, 1]} : vector<2x128xf32> to vector<2x32xf32>
    %148 = vector.extract_strided_slice %143 {offsets = [0, 96], sizes = [2, 32], strides = [1, 1]} : vector<2x128xf32> to vector<2x32xf32>
    %149 = arith.mulf %146, %101 : vector<2x32xf32>
    %150 = arith.mulf %145, %147 : vector<2x32xf32>
    %151 = arith.addf %149, %150 : vector<2x32xf32>
    %152 = math.tanh %151 : vector<2x32xf32>
    %153 = arith.mulf %148, %152 : vector<2x32xf32>
    %c3 = arith.constant 3 : index
    %c0_51 = arith.constant 0 : index
    %c0_52 = arith.constant 0 : index
    %c0_53 = arith.constant 0 : index
    %154 = vector.load %arg0[%c3, %c0_51, %c0_52, %c0_53] : memref<8x2x8x128xf32, #tpu.memory_space<vmem>>, vector<1x2x8x128xf32>
    %155 = vector.shape_cast %154 : vector<1x2x8x128xf32> to vector<2x8x128xf32>
    %c3_54 = arith.constant 3 : index
    %c0_55 = arith.constant 0 : index
    %c0_56 = arith.constant 0 : index
    %156 = vector.load %arg1[%c3_54, %c0_55, %c0_56] : memref<8x1x128xf32, #tpu.memory_space<vmem>>, vector<1x1x128xf32>
    %157 = vector.shape_cast %156 : vector<1x1x128xf32> to vector<1x128xf32>
    %158 = tpu.concatenate %151, %153 in 1 : vector<2x32xf32>, vector<2x32xf32> -> vector<2x64xf32>
    %159 = arith.truncf %158 : vector<2x64xf32> to vector<2x64xbf16>
    %c3_57 = arith.constant 3 : index
    %c0_58 = arith.constant 0 : index
    %c0_59 = arith.constant 0 : index
    %160 = vector.load %arg3[%c3_57, %c0_58, %c0_59] : memref<8x64x256xbf16, #tpu.memory_space<vmem>>, vector<1x64x256xbf16>
    %161 = vector.shape_cast %160 : vector<1x64x256xbf16> to vector<64x256xbf16>
    %cst_60 = arith.constant dense<0.000000e+00> : vector<2x256xf32>
    %162 = tpu.matmul %159, %161, %cst_60 {dimension_numbers = #tpu.dot_dimension_numbers<[1], [0], [0], [1], [0, 0, 1, 1], [], []>} : vector<2x64xbf16>, vector<64x256xbf16>, vector<2x256xf32> -> vector<2x256xf32>
    %163 = vector.extract_strided_slice %162 {offsets = [0, 0], sizes = [2, 128], strides = [1, 1]} : vector<2x256xf32> to vector<2x128xf32>
    %164 = vector.extract_strided_slice %162 {offsets = [0, 128], sizes = [2, 128], strides = [1, 1]} : vector<2x256xf32> to vector<2x128xf32>
    %165 = vector.shape_cast %163 : vector<2x128xf32> to vector<2x1x128xf32>
    %166 = vector.broadcast %165 : vector<2x1x128xf32> to vector<2x8x128xf32>
    %167 = arith.addf %155, %166 : vector<2x8x128xf32>
    %168 = math.tanh %167 : vector<2x8x128xf32>
    %169 = vector.shape_cast %157 : vector<1x128xf32> to vector<1x1x128xf32>
    %170 = vector.broadcast %169 : vector<1x1x128xf32> to vector<2x8x128xf32>
    %171 = arith.mulf %168, %170 : vector<2x8x128xf32>
    %cst_61 = arith.constant dense<0.000000e+00> : vector<2x8xf32>
    %172 = vector.multi_reduction <add>, %171, %cst_61 [2] : vector<2x8x128xf32> to vector<2x8xf32>
    %cst_62 = arith.constant dense<0xFF800000> : vector<2xf32>
    %173 = vector.multi_reduction <maximumf>, %172, %cst_62 [1] : vector<2x8xf32> to vector<2xf32>
    %174 = vector.shape_cast %173 : vector<2xf32> to vector<2x1xf32>
    %175 = vector.broadcast %174 : vector<2x1xf32> to vector<2x8xf32>
    %176 = arith.subf %172, %175 : vector<2x8xf32>
    %177 = math.exp %176 : vector<2x8xf32>
    %cst_63 = arith.constant dense<0.000000e+00> : vector<2xf32>
    %178 = vector.multi_reduction <add>, %177, %cst_63 [1] : vector<2x8xf32> to vector<2xf32>
    %179 = vector.shape_cast %178 : vector<2xf32> to vector<2x1xf32>
    %180 = vector.broadcast %179 : vector<2x1xf32> to vector<2x8xf32>
    %181 = arith.divf %177, %180 : vector<2x8xf32>
    %182 = vector.shape_cast %181 : vector<2x8xf32> to vector<2x8x1xf32>
    %183 = vector.broadcast %182 : vector<2x8x1xf32> to vector<2x8x128xf32>
    %184 = arith.mulf %183, %0 : vector<2x8x128xf32>
    %cst_64 = arith.constant dense<0.000000e+00> : vector<2x128xf32>
    %185 = vector.multi_reduction <add>, %184, %cst_64 [1] : vector<2x8x128xf32> to vector<2x128xf32>
    %186 = arith.addf %185, %164 : vector<2x128xf32>
    %187 = vector.broadcast %1 : vector<1x128xf32> to vector<2x128xf32>
    %188 = arith.addf %186, %187 : vector<2x128xf32>
    %189 = arith.negf %188 : vector<2x128xf32>
    %190 = math.exp %189 : vector<2x128xf32>
    %cst_65 = arith.constant 1.000000e+00 : f32
    %191 = vector.broadcast %cst_65 : f32 to vector<2x128xf32>
    %192 = arith.addf %191, %190 : vector<2x128xf32>
    %193 = arith.divf %191, %192 : vector<2x128xf32>
    %194 = math.tanh %188 : vector<2x128xf32>
    %195 = vector.extract_strided_slice %193 {offsets = [0, 0], sizes = [2, 32], strides = [1, 1]} : vector<2x128xf32> to vector<2x32xf32>
    %196 = vector.extract_strided_slice %193 {offsets = [0, 32], sizes = [2, 32], strides = [1, 1]} : vector<2x128xf32> to vector<2x32xf32>
    %197 = vector.extract_strided_slice %194 {offsets = [0, 64], sizes = [2, 32], strides = [1, 1]} : vector<2x128xf32> to vector<2x32xf32>
    %198 = vector.extract_strided_slice %193 {offsets = [0, 96], sizes = [2, 32], strides = [1, 1]} : vector<2x128xf32> to vector<2x32xf32>
    %199 = arith.mulf %196, %151 : vector<2x32xf32>
    %200 = arith.mulf %195, %197 : vector<2x32xf32>
    %201 = arith.addf %199, %200 : vector<2x32xf32>
    %202 = math.tanh %201 : vector<2x32xf32>
    %203 = arith.mulf %198, %202 : vector<2x32xf32>
    %c4 = arith.constant 4 : index
    %c0_66 = arith.constant 0 : index
    %c0_67 = arith.constant 0 : index
    %c0_68 = arith.constant 0 : index
    %204 = vector.load %arg0[%c4, %c0_66, %c0_67, %c0_68] : memref<8x2x8x128xf32, #tpu.memory_space<vmem>>, vector<1x2x8x128xf32>
    %205 = vector.shape_cast %204 : vector<1x2x8x128xf32> to vector<2x8x128xf32>
    %c4_69 = arith.constant 4 : index
    %c0_70 = arith.constant 0 : index
    %c0_71 = arith.constant 0 : index
    %206 = vector.load %arg1[%c4_69, %c0_70, %c0_71] : memref<8x1x128xf32, #tpu.memory_space<vmem>>, vector<1x1x128xf32>
    %207 = vector.shape_cast %206 : vector<1x1x128xf32> to vector<1x128xf32>
    %208 = tpu.concatenate %201, %203 in 1 : vector<2x32xf32>, vector<2x32xf32> -> vector<2x64xf32>
    %209 = arith.truncf %208 : vector<2x64xf32> to vector<2x64xbf16>
    %c4_72 = arith.constant 4 : index
    %c0_73 = arith.constant 0 : index
    %c0_74 = arith.constant 0 : index
    %210 = vector.load %arg3[%c4_72, %c0_73, %c0_74] : memref<8x64x256xbf16, #tpu.memory_space<vmem>>, vector<1x64x256xbf16>
    %211 = vector.shape_cast %210 : vector<1x64x256xbf16> to vector<64x256xbf16>
    %cst_75 = arith.constant dense<0.000000e+00> : vector<2x256xf32>
    %212 = tpu.matmul %209, %211, %cst_75 {dimension_numbers = #tpu.dot_dimension_numbers<[1], [0], [0], [1], [0, 0, 1, 1], [], []>} : vector<2x64xbf16>, vector<64x256xbf16>, vector<2x256xf32> -> vector<2x256xf32>
    %213 = vector.extract_strided_slice %212 {offsets = [0, 0], sizes = [2, 128], strides = [1, 1]} : vector<2x256xf32> to vector<2x128xf32>
    %214 = vector.extract_strided_slice %212 {offsets = [0, 128], sizes = [2, 128], strides = [1, 1]} : vector<2x256xf32> to vector<2x128xf32>
    %215 = vector.shape_cast %213 : vector<2x128xf32> to vector<2x1x128xf32>
    %216 = vector.broadcast %215 : vector<2x1x128xf32> to vector<2x8x128xf32>
    %217 = arith.addf %205, %216 : vector<2x8x128xf32>
    %218 = math.tanh %217 : vector<2x8x128xf32>
    %219 = vector.shape_cast %207 : vector<1x128xf32> to vector<1x1x128xf32>
    %220 = vector.broadcast %219 : vector<1x1x128xf32> to vector<2x8x128xf32>
    %221 = arith.mulf %218, %220 : vector<2x8x128xf32>
    %cst_76 = arith.constant dense<0.000000e+00> : vector<2x8xf32>
    %222 = vector.multi_reduction <add>, %221, %cst_76 [2] : vector<2x8x128xf32> to vector<2x8xf32>
    %cst_77 = arith.constant dense<0xFF800000> : vector<2xf32>
    %223 = vector.multi_reduction <maximumf>, %222, %cst_77 [1] : vector<2x8xf32> to vector<2xf32>
    %224 = vector.shape_cast %223 : vector<2xf32> to vector<2x1xf32>
    %225 = vector.broadcast %224 : vector<2x1xf32> to vector<2x8xf32>
    %226 = arith.subf %222, %225 : vector<2x8xf32>
    %227 = math.exp %226 : vector<2x8xf32>
    %cst_78 = arith.constant dense<0.000000e+00> : vector<2xf32>
    %228 = vector.multi_reduction <add>, %227, %cst_78 [1] : vector<2x8xf32> to vector<2xf32>
    %229 = vector.shape_cast %228 : vector<2xf32> to vector<2x1xf32>
    %230 = vector.broadcast %229 : vector<2x1xf32> to vector<2x8xf32>
    %231 = arith.divf %227, %230 : vector<2x8xf32>
    %232 = vector.shape_cast %231 : vector<2x8xf32> to vector<2x8x1xf32>
    %233 = vector.broadcast %232 : vector<2x8x1xf32> to vector<2x8x128xf32>
    %234 = arith.mulf %233, %0 : vector<2x8x128xf32>
    %cst_79 = arith.constant dense<0.000000e+00> : vector<2x128xf32>
    %235 = vector.multi_reduction <add>, %234, %cst_79 [1] : vector<2x8x128xf32> to vector<2x128xf32>
    %236 = arith.addf %235, %214 : vector<2x128xf32>
    %237 = vector.broadcast %1 : vector<1x128xf32> to vector<2x128xf32>
    %238 = arith.addf %236, %237 : vector<2x128xf32>
    %239 = arith.negf %238 : vector<2x128xf32>
    %240 = math.exp %239 : vector<2x128xf32>
    %cst_80 = arith.constant 1.000000e+00 : f32
    %241 = vector.broadcast %cst_80 : f32 to vector<2x128xf32>
    %242 = arith.addf %241, %240 : vector<2x128xf32>
    %243 = arith.divf %241, %242 : vector<2x128xf32>
    %244 = math.tanh %238 : vector<2x128xf32>
    %245 = vector.extract_strided_slice %243 {offsets = [0, 0], sizes = [2, 32], strides = [1, 1]} : vector<2x128xf32> to vector<2x32xf32>
    %246 = vector.extract_strided_slice %243 {offsets = [0, 32], sizes = [2, 32], strides = [1, 1]} : vector<2x128xf32> to vector<2x32xf32>
    %247 = vector.extract_strided_slice %244 {offsets = [0, 64], sizes = [2, 32], strides = [1, 1]} : vector<2x128xf32> to vector<2x32xf32>
    %248 = vector.extract_strided_slice %243 {offsets = [0, 96], sizes = [2, 32], strides = [1, 1]} : vector<2x128xf32> to vector<2x32xf32>
    %249 = arith.mulf %246, %201 : vector<2x32xf32>
    %250 = arith.mulf %245, %247 : vector<2x32xf32>
    %251 = arith.addf %249, %250 : vector<2x32xf32>
    %252 = math.tanh %251 : vector<2x32xf32>
    %253 = arith.mulf %248, %252 : vector<2x32xf32>
    %c5 = arith.constant 5 : index
    %c0_81 = arith.constant 0 : index
    %c0_82 = arith.constant 0 : index
    %c0_83 = arith.constant 0 : index
    %254 = vector.load %arg0[%c5, %c0_81, %c0_82, %c0_83] : memref<8x2x8x128xf32, #tpu.memory_space<vmem>>, vector<1x2x8x128xf32>
    %255 = vector.shape_cast %254 : vector<1x2x8x128xf32> to vector<2x8x128xf32>
    %c5_84 = arith.constant 5 : index
    %c0_85 = arith.constant 0 : index
    %c0_86 = arith.constant 0 : index
    %256 = vector.load %arg1[%c5_84, %c0_85, %c0_86] : memref<8x1x128xf32, #tpu.memory_space<vmem>>, vector<1x1x128xf32>
    %257 = vector.shape_cast %256 : vector<1x1x128xf32> to vector<1x128xf32>
    %258 = tpu.concatenate %251, %253 in 1 : vector<2x32xf32>, vector<2x32xf32> -> vector<2x64xf32>
    %259 = arith.truncf %258 : vector<2x64xf32> to vector<2x64xbf16>
    %c5_87 = arith.constant 5 : index
    %c0_88 = arith.constant 0 : index
    %c0_89 = arith.constant 0 : index
    %260 = vector.load %arg3[%c5_87, %c0_88, %c0_89] : memref<8x64x256xbf16, #tpu.memory_space<vmem>>, vector<1x64x256xbf16>
    %261 = vector.shape_cast %260 : vector<1x64x256xbf16> to vector<64x256xbf16>
    %cst_90 = arith.constant dense<0.000000e+00> : vector<2x256xf32>
    %262 = tpu.matmul %259, %261, %cst_90 {dimension_numbers = #tpu.dot_dimension_numbers<[1], [0], [0], [1], [0, 0, 1, 1], [], []>} : vector<2x64xbf16>, vector<64x256xbf16>, vector<2x256xf32> -> vector<2x256xf32>
    %263 = vector.extract_strided_slice %262 {offsets = [0, 0], sizes = [2, 128], strides = [1, 1]} : vector<2x256xf32> to vector<2x128xf32>
    %264 = vector.extract_strided_slice %262 {offsets = [0, 128], sizes = [2, 128], strides = [1, 1]} : vector<2x256xf32> to vector<2x128xf32>
    %265 = vector.shape_cast %263 : vector<2x128xf32> to vector<2x1x128xf32>
    %266 = vector.broadcast %265 : vector<2x1x128xf32> to vector<2x8x128xf32>
    %267 = arith.addf %255, %266 : vector<2x8x128xf32>
    %268 = math.tanh %267 : vector<2x8x128xf32>
    %269 = vector.shape_cast %257 : vector<1x128xf32> to vector<1x1x128xf32>
    %270 = vector.broadcast %269 : vector<1x1x128xf32> to vector<2x8x128xf32>
    %271 = arith.mulf %268, %270 : vector<2x8x128xf32>
    %cst_91 = arith.constant dense<0.000000e+00> : vector<2x8xf32>
    %272 = vector.multi_reduction <add>, %271, %cst_91 [2] : vector<2x8x128xf32> to vector<2x8xf32>
    %cst_92 = arith.constant dense<0xFF800000> : vector<2xf32>
    %273 = vector.multi_reduction <maximumf>, %272, %cst_92 [1] : vector<2x8xf32> to vector<2xf32>
    %274 = vector.shape_cast %273 : vector<2xf32> to vector<2x1xf32>
    %275 = vector.broadcast %274 : vector<2x1xf32> to vector<2x8xf32>
    %276 = arith.subf %272, %275 : vector<2x8xf32>
    %277 = math.exp %276 : vector<2x8xf32>
    %cst_93 = arith.constant dense<0.000000e+00> : vector<2xf32>
    %278 = vector.multi_reduction <add>, %277, %cst_93 [1] : vector<2x8xf32> to vector<2xf32>
    %279 = vector.shape_cast %278 : vector<2xf32> to vector<2x1xf32>
    %280 = vector.broadcast %279 : vector<2x1xf32> to vector<2x8xf32>
    %281 = arith.divf %277, %280 : vector<2x8xf32>
    %282 = vector.shape_cast %281 : vector<2x8xf32> to vector<2x8x1xf32>
    %283 = vector.broadcast %282 : vector<2x8x1xf32> to vector<2x8x128xf32>
    %284 = arith.mulf %283, %0 : vector<2x8x128xf32>
    %cst_94 = arith.constant dense<0.000000e+00> : vector<2x128xf32>
    %285 = vector.multi_reduction <add>, %284, %cst_94 [1] : vector<2x8x128xf32> to vector<2x128xf32>
    %286 = arith.addf %285, %264 : vector<2x128xf32>
    %287 = vector.broadcast %1 : vector<1x128xf32> to vector<2x128xf32>
    %288 = arith.addf %286, %287 : vector<2x128xf32>
    %289 = arith.negf %288 : vector<2x128xf32>
    %290 = math.exp %289 : vector<2x128xf32>
    %cst_95 = arith.constant 1.000000e+00 : f32
    %291 = vector.broadcast %cst_95 : f32 to vector<2x128xf32>
    %292 = arith.addf %291, %290 : vector<2x128xf32>
    %293 = arith.divf %291, %292 : vector<2x128xf32>
    %294 = math.tanh %288 : vector<2x128xf32>
    %295 = vector.extract_strided_slice %293 {offsets = [0, 0], sizes = [2, 32], strides = [1, 1]} : vector<2x128xf32> to vector<2x32xf32>
    %296 = vector.extract_strided_slice %293 {offsets = [0, 32], sizes = [2, 32], strides = [1, 1]} : vector<2x128xf32> to vector<2x32xf32>
    %297 = vector.extract_strided_slice %294 {offsets = [0, 64], sizes = [2, 32], strides = [1, 1]} : vector<2x128xf32> to vector<2x32xf32>
    %298 = vector.extract_strided_slice %293 {offsets = [0, 96], sizes = [2, 32], strides = [1, 1]} : vector<2x128xf32> to vector<2x32xf32>
    %299 = arith.mulf %296, %251 : vector<2x32xf32>
    %300 = arith.mulf %295, %297 : vector<2x32xf32>
    %301 = arith.addf %299, %300 : vector<2x32xf32>
    %302 = math.tanh %301 : vector<2x32xf32>
    %303 = arith.mulf %298, %302 : vector<2x32xf32>
    %c6 = arith.constant 6 : index
    %c0_96 = arith.constant 0 : index
    %c0_97 = arith.constant 0 : index
    %c0_98 = arith.constant 0 : index
    %304 = vector.load %arg0[%c6, %c0_96, %c0_97, %c0_98] : memref<8x2x8x128xf32, #tpu.memory_space<vmem>>, vector<1x2x8x128xf32>
    %305 = vector.shape_cast %304 : vector<1x2x8x128xf32> to vector<2x8x128xf32>
    %c6_99 = arith.constant 6 : index
    %c0_100 = arith.constant 0 : index
    %c0_101 = arith.constant 0 : index
    %306 = vector.load %arg1[%c6_99, %c0_100, %c0_101] : memref<8x1x128xf32, #tpu.memory_space<vmem>>, vector<1x1x128xf32>
    %307 = vector.shape_cast %306 : vector<1x1x128xf32> to vector<1x128xf32>
    %308 = tpu.concatenate %301, %303 in 1 : vector<2x32xf32>, vector<2x32xf32> -> vector<2x64xf32>
    %309 = arith.truncf %308 : vector<2x64xf32> to vector<2x64xbf16>
    %c6_102 = arith.constant 6 : index
    %c0_103 = arith.constant 0 : index
    %c0_104 = arith.constant 0 : index
    %310 = vector.load %arg3[%c6_102, %c0_103, %c0_104] : memref<8x64x256xbf16, #tpu.memory_space<vmem>>, vector<1x64x256xbf16>
    %311 = vector.shape_cast %310 : vector<1x64x256xbf16> to vector<64x256xbf16>
    %cst_105 = arith.constant dense<0.000000e+00> : vector<2x256xf32>
    %312 = tpu.matmul %309, %311, %cst_105 {dimension_numbers = #tpu.dot_dimension_numbers<[1], [0], [0], [1], [0, 0, 1, 1], [], []>} : vector<2x64xbf16>, vector<64x256xbf16>, vector<2x256xf32> -> vector<2x256xf32>
    %313 = vector.extract_strided_slice %312 {offsets = [0, 0], sizes = [2, 128], strides = [1, 1]} : vector<2x256xf32> to vector<2x128xf32>
    %314 = vector.extract_strided_slice %312 {offsets = [0, 128], sizes = [2, 128], strides = [1, 1]} : vector<2x256xf32> to vector<2x128xf32>
    %315 = vector.shape_cast %313 : vector<2x128xf32> to vector<2x1x128xf32>
    %316 = vector.broadcast %315 : vector<2x1x128xf32> to vector<2x8x128xf32>
    %317 = arith.addf %305, %316 : vector<2x8x128xf32>
    %318 = math.tanh %317 : vector<2x8x128xf32>
    %319 = vector.shape_cast %307 : vector<1x128xf32> to vector<1x1x128xf32>
    %320 = vector.broadcast %319 : vector<1x1x128xf32> to vector<2x8x128xf32>
    %321 = arith.mulf %318, %320 : vector<2x8x128xf32>
    %cst_106 = arith.constant dense<0.000000e+00> : vector<2x8xf32>
    %322 = vector.multi_reduction <add>, %321, %cst_106 [2] : vector<2x8x128xf32> to vector<2x8xf32>
    %cst_107 = arith.constant dense<0xFF800000> : vector<2xf32>
    %323 = vector.multi_reduction <maximumf>, %322, %cst_107 [1] : vector<2x8xf32> to vector<2xf32>
    %324 = vector.shape_cast %323 : vector<2xf32> to vector<2x1xf32>
    %325 = vector.broadcast %324 : vector<2x1xf32> to vector<2x8xf32>
    %326 = arith.subf %322, %325 : vector<2x8xf32>
    %327 = math.exp %326 : vector<2x8xf32>
    %cst_108 = arith.constant dense<0.000000e+00> : vector<2xf32>
    %328 = vector.multi_reduction <add>, %327, %cst_108 [1] : vector<2x8xf32> to vector<2xf32>
    %329 = vector.shape_cast %328 : vector<2xf32> to vector<2x1xf32>
    %330 = vector.broadcast %329 : vector<2x1xf32> to vector<2x8xf32>
    %331 = arith.divf %327, %330 : vector<2x8xf32>
    %332 = vector.shape_cast %331 : vector<2x8xf32> to vector<2x8x1xf32>
    %333 = vector.broadcast %332 : vector<2x8x1xf32> to vector<2x8x128xf32>
    %334 = arith.mulf %333, %0 : vector<2x8x128xf32>
    %cst_109 = arith.constant dense<0.000000e+00> : vector<2x128xf32>
    %335 = vector.multi_reduction <add>, %334, %cst_109 [1] : vector<2x8x128xf32> to vector<2x128xf32>
    %336 = arith.addf %335, %314 : vector<2x128xf32>
    %337 = vector.broadcast %1 : vector<1x128xf32> to vector<2x128xf32>
    %338 = arith.addf %336, %337 : vector<2x128xf32>
    %339 = arith.negf %338 : vector<2x128xf32>
    %340 = math.exp %339 : vector<2x128xf32>
    %cst_110 = arith.constant 1.000000e+00 : f32
    %341 = vector.broadcast %cst_110 : f32 to vector<2x128xf32>
    %342 = arith.addf %341, %340 : vector<2x128xf32>
    %343 = arith.divf %341, %342 : vector<2x128xf32>
    %344 = math.tanh %338 : vector<2x128xf32>
    %345 = vector.extract_strided_slice %343 {offsets = [0, 0], sizes = [2, 32], strides = [1, 1]} : vector<2x128xf32> to vector<2x32xf32>
    %346 = vector.extract_strided_slice %343 {offsets = [0, 32], sizes = [2, 32], strides = [1, 1]} : vector<2x128xf32> to vector<2x32xf32>
    %347 = vector.extract_strided_slice %344 {offsets = [0, 64], sizes = [2, 32], strides = [1, 1]} : vector<2x128xf32> to vector<2x32xf32>
    %348 = vector.extract_strided_slice %343 {offsets = [0, 96], sizes = [2, 32], strides = [1, 1]} : vector<2x128xf32> to vector<2x32xf32>
    %349 = arith.mulf %346, %301 : vector<2x32xf32>
    %350 = arith.mulf %345, %347 : vector<2x32xf32>
    %351 = arith.addf %349, %350 : vector<2x32xf32>
    %352 = math.tanh %351 : vector<2x32xf32>
    %353 = arith.mulf %348, %352 : vector<2x32xf32>
    %c7 = arith.constant 7 : index
    %c0_111 = arith.constant 0 : index
    %c0_112 = arith.constant 0 : index
    %c0_113 = arith.constant 0 : index
    %354 = vector.load %arg0[%c7, %c0_111, %c0_112, %c0_113] : memref<8x2x8x128xf32, #tpu.memory_space<vmem>>, vector<1x2x8x128xf32>
    %355 = vector.shape_cast %354 : vector<1x2x8x128xf32> to vector<2x8x128xf32>
    %c7_114 = arith.constant 7 : index
    %c0_115 = arith.constant 0 : index
    %c0_116 = arith.constant 0 : index
    %356 = vector.load %arg1[%c7_114, %c0_115, %c0_116] : memref<8x1x128xf32, #tpu.memory_space<vmem>>, vector<1x1x128xf32>
    %357 = vector.shape_cast %356 : vector<1x1x128xf32> to vector<1x128xf32>
    %358 = tpu.concatenate %351, %353 in 1 : vector<2x32xf32>, vector<2x32xf32> -> vector<2x64xf32>
    %359 = arith.truncf %358 : vector<2x64xf32> to vector<2x64xbf16>
    %c7_117 = arith.constant 7 : index
    %c0_118 = arith.constant 0 : index
    %c0_119 = arith.constant 0 : index
    %360 = vector.load %arg3[%c7_117, %c0_118, %c0_119] : memref<8x64x256xbf16, #tpu.memory_space<vmem>>, vector<1x64x256xbf16>
    %361 = vector.shape_cast %360 : vector<1x64x256xbf16> to vector<64x256xbf16>
    %cst_120 = arith.constant dense<0.000000e+00> : vector<2x256xf32>
    %362 = tpu.matmul %359, %361, %cst_120 {dimension_numbers = #tpu.dot_dimension_numbers<[1], [0], [0], [1], [0, 0, 1, 1], [], []>} : vector<2x64xbf16>, vector<64x256xbf16>, vector<2x256xf32> -> vector<2x256xf32>
    %363 = vector.extract_strided_slice %362 {offsets = [0, 0], sizes = [2, 128], strides = [1, 1]} : vector<2x256xf32> to vector<2x128xf32>
    %364 = vector.extract_strided_slice %362 {offsets = [0, 128], sizes = [2, 128], strides = [1, 1]} : vector<2x256xf32> to vector<2x128xf32>
    %365 = vector.shape_cast %363 : vector<2x128xf32> to vector<2x1x128xf32>
    %366 = vector.broadcast %365 : vector<2x1x128xf32> to vector<2x8x128xf32>
    %367 = arith.addf %355, %366 : vector<2x8x128xf32>
    %368 = math.tanh %367 : vector<2x8x128xf32>
    %369 = vector.shape_cast %357 : vector<1x128xf32> to vector<1x1x128xf32>
    %370 = vector.broadcast %369 : vector<1x1x128xf32> to vector<2x8x128xf32>
    %371 = arith.mulf %368, %370 : vector<2x8x128xf32>
    %cst_121 = arith.constant dense<0.000000e+00> : vector<2x8xf32>
    %372 = vector.multi_reduction <add>, %371, %cst_121 [2] : vector<2x8x128xf32> to vector<2x8xf32>
    %cst_122 = arith.constant dense<0xFF800000> : vector<2xf32>
    %373 = vector.multi_reduction <maximumf>, %372, %cst_122 [1] : vector<2x8xf32> to vector<2xf32>
    %374 = vector.shape_cast %373 : vector<2xf32> to vector<2x1xf32>
    %375 = vector.broadcast %374 : vector<2x1xf32> to vector<2x8xf32>
    %376 = arith.subf %372, %375 : vector<2x8xf32>
    %377 = math.exp %376 : vector<2x8xf32>
    %cst_123 = arith.constant dense<0.000000e+00> : vector<2xf32>
    %378 = vector.multi_reduction <add>, %377, %cst_123 [1] : vector<2x8xf32> to vector<2xf32>
    %379 = vector.shape_cast %378 : vector<2xf32> to vector<2x1xf32>
    %380 = vector.broadcast %379 : vector<2x1xf32> to vector<2x8xf32>
    %381 = arith.divf %377, %380 : vector<2x8xf32>
    %382 = vector.shape_cast %381 : vector<2x8xf32> to vector<2x8x1xf32>
    %383 = vector.broadcast %382 : vector<2x8x1xf32> to vector<2x8x128xf32>
    %384 = arith.mulf %383, %0 : vector<2x8x128xf32>
    %cst_124 = arith.constant dense<0.000000e+00> : vector<2x128xf32>
    %385 = vector.multi_reduction <add>, %384, %cst_124 [1] : vector<2x8x128xf32> to vector<2x128xf32>
    %386 = arith.addf %385, %364 : vector<2x128xf32>
    %387 = vector.broadcast %1 : vector<1x128xf32> to vector<2x128xf32>
    %388 = arith.addf %386, %387 : vector<2x128xf32>
    %389 = arith.negf %388 : vector<2x128xf32>
    %390 = math.exp %389 : vector<2x128xf32>
    %cst_125 = arith.constant 1.000000e+00 : f32
    %391 = vector.broadcast %cst_125 : f32 to vector<2x128xf32>
    %392 = arith.addf %391, %390 : vector<2x128xf32>
    %393 = arith.divf %391, %392 : vector<2x128xf32>
    %394 = math.tanh %388 : vector<2x128xf32>
    %395 = vector.extract_strided_slice %393 {offsets = [0, 0], sizes = [2, 32], strides = [1, 1]} : vector<2x128xf32> to vector<2x32xf32>
    %396 = vector.extract_strided_slice %393 {offsets = [0, 32], sizes = [2, 32], strides = [1, 1]} : vector<2x128xf32> to vector<2x32xf32>
    %397 = vector.extract_strided_slice %394 {offsets = [0, 64], sizes = [2, 32], strides = [1, 1]} : vector<2x128xf32> to vector<2x32xf32>
    %398 = vector.extract_strided_slice %393 {offsets = [0, 96], sizes = [2, 32], strides = [1, 1]} : vector<2x128xf32> to vector<2x32xf32>
    %399 = arith.mulf %396, %351 : vector<2x32xf32>
    %400 = arith.mulf %395, %397 : vector<2x32xf32>
    %401 = arith.addf %399, %400 : vector<2x32xf32>
    %402 = math.tanh %401 : vector<2x32xf32>
    %403 = arith.mulf %398, %402 : vector<2x32xf32>
    %404 = tpu.concatenate %53, %103, %153, %203, %253, %303, %353, %403 in 1 : vector<2x32xf32>, vector<2x32xf32>, vector<2x32xf32>, vector<2x32xf32>, vector<2x32xf32>, vector<2x32xf32>, vector<2x32xf32>, vector<2x32xf32> -> vector<2x256xf32>
    %c0_126 = arith.constant 0 : index
    %c0_127 = arith.constant 0 : index
    %405 = vector.load %arg8[%c0_126, %c0_127] : memref<2x256xf32, #tpu.memory_space<vmem>>, vector<2x256xf32>
    tpu.vector_store %arg8[%c0_126, %c0_127], %404 {strides = array<i32>} : memref<2x256xf32, #tpu.memory_space<vmem>>, vector<2x256xf32>,
    %c0_128 = arith.constant 0 : index
    %c0_129 = arith.constant 0 : index
    %406 = vector.load %arg5[%c0_128, %c0_129] : memref<32x2xf32, #tpu.memory_space<vmem>>, vector<32x2xf32>
    %cst_130 = arith.constant dense<0.000000e+00> : vector<2x2xf32>
    %407 = tpu.matmul %403, %406, %cst_130 {dimension_numbers = #tpu.dot_dimension_numbers<[1], [0], [0], [1], [0, 0, 1, 1], [], []>} : vector<2x32xf32>, vector<32x2xf32>, vector<2x2xf32> -> vector<2x2xf32>
    %c0_131 = arith.constant 0 : index
    %c0_132 = arith.constant 0 : index
    %408 = vector.load %arg6[%c0_131, %c0_132] : memref<1x2xf32, #tpu.memory_space<vmem>>, vector<1x2xf32>
    %409 = vector.broadcast %408 : vector<1x2xf32> to vector<2x2xf32>
    %410 = arith.addf %407, %409 : vector<2x2xf32>
    %c0_133 = arith.constant 0 : index
    %c0_134 = arith.constant 0 : index
    %411 = vector.load %arg7[%c0_133, %c0_134] : memref<2x2xf32, #tpu.memory_space<vmem>>, vector<2x2xf32>
    tpu.vector_store %arg7[%c0_133, %c0_134], %410 {strides = array<i32>} : memref<2x2xf32, #tpu.memory_space<vmem>>, vector<2x2xf32>,
    return
  }
}

</mosaic_0001>

<bundles_post_ra>
// kernel: temporal_lstm_forward.1
= control target key start
LH: loop header
LB: loop body
LE: loop exit
PB: predicated region body
PF: predicated region fallthrough
CT: control target
= control target key end

     0   :  { %v3213_v2 = vmov 0   ;;  %v3214_v9 = vmov 0.0|0.0   ;;  %s4011_s0 = inlined_call_operand.vmem [shape: f32[8,2,8,128], index: 0, kind: input, shape index: {}]   ;;  %s4012_s1 = inlined_call_operand.vmem [shape: f32[8,1,128], index: 1, kind: input, shape index: {}]   ;;  %s4013_s2 = inlined_call_operand.vmem [shape: f32[2,8,128], index: 2, kind: input, shape index: {}]   ;;  %s4014_s3 = inlined_call_operand.vmem [shape: bf16[8,64,256], index: 3, kind: input, shape index: {}]   ;;  %s4015_s4 = inlined_call_operand.vmem [shape: f32[1,128], index: 4, kind: input, shape index: {}]   ;;  %s4016_s5 = inlined_call_operand.vmem [shape: f32[32,2], index: 5, kind: input, shape index: {}]   ;;  %s4017_s6 = inlined_call_operand.vmem [shape: f32[1,2], index: 6, kind: input, shape index: {}]   ;;  %s4018_s7 = inlined_call_operand.hbm [shape: f32[2,2], index: 7, kind: output, shape index: {0}]   ;;  %s4019_s8 = inlined_call_operand.vmem [shape: f32[2,256], index: 8, kind: output, shape index: {1}]  }
   0x1   :  { %v2866_v0 = vld [vmem:[%s4014_s3 + $0x4] ss:$8 sps:$4 sm:$0xff]   ;;  %v2868_v1 = vld [vmem:[%s4014_s3] ss:$8 sps:$4 sm:$0xff]   ;;  %121 = vmatprep.mubr.bf16.mxu0 %v3213_v2  ;;  %2865 = vset.pattern.permute.xlu0 %v3213_v2  ;;  %v2869_v3 = vld [vmem:[%s4014_s3 + $0x14] ss:$8 sps:$4 sm:$0xff]  }
   0x2   :  { %89 = vmatprep.subr.bf16.mxu0 %v2866_v0  ;;  %2864 = vset.pattern.permute.xlu1 %v3213_v2  ;;  %v2871_v4 = vld [vmem:[%s4014_s3 + $0x10] ss:$8 sps:$4 sm:$0xff]   ;;  %v2872_v5 = vld [vmem:[%s4014_s3 + $0x24] ss:$8 sps:$4 sm:$0xff]   ;;  %v2874_v6 = vld [vmem:[%s4014_s3 + $0x20] ss:$8 sps:$4 sm:$0xff]  }
   0x3   :  { %90 = vmatpush1.bf16.msra.mxu0 %v2868_v1  ;;  %443 = vmatprep.mubr.bf16.mxu1 %v3213_v2  ;;  %v2875_v7 = vld [vmem:[%s4014_s3 + $0x34] ss:$8 sps:$4 sm:$0xff]   ;;  %v2877_v8 = vld [vmem:[%s4014_s3 + $0x30] ss:$8 sps:$4 sm:$0xff]  }
   0x4   :  { %91 = vmatprep.subr.bf16.mxu0 %v2869_v3 }
   0x7   :  { %92 = vmatpush1.bf16.msra.mxu0 %v2871_v4 }
   0x8   :  { %93 = vmatprep.subr.bf16.mxu0 %v2872_v5 }
   0xb   :  { %94 = vmatpush1.bf16.msra.mxu0 %v2874_v6 }
   0xc   :  { %95 = vmatprep.subr.bf16.mxu0 %v2875_v7 }
   0xf   :  { %96 = vmatpush1.bf16.msra.mxu0 %v2877_v8 }
  0x12   :  { %122 = vmatmul.mubr.bf16.vlgmr.msra.gmra.mrb[0].mxu0 %v3214_v9 }
  0x13   :  { %754 = vmatprep.mubr.bf16.mxu0 %v3213_v2 }
  0x14   :  { %14 = vsyncpa [#allocation3], 0  ;;  %v3215_v10 = vmov 1966171168   ;;  %v134_v12 = vlaneseq  ;;  %v33_v24 = vld [vmem:[%s4011_s0] sm:$0xff]  ;;  %v34_v27 = vld [vmem:[%s4011_s0 + $0x8] sm:$0xff] }
  0x15   :  { %v132_v11 = vunpack.c.l.s4 %v3215_v10  ;;  %v2665_v31 = vld [vmem:[%s4012_s1] ss:$0 sm:$0xff]  ;;  %vm191_vm0 = vcmask 1041409   ;;  %vm194_vm1 = vcmask 58368   ;;  %v3336_v4 = vld [vmem:[%s4013_s2 + $0x8] sm:$0xff]  ;;  %s3216_s11 = smov 64  }
  0x16   :  { %v135_v14 = vshrl.u32 %v134_v12, 7  ;;  %v182_v36 = vand.u32 127, %v134_v12  ;;  %v3342_v7 = vld [vmem:[%s4013_s2] sm:$0xff]  ;;  %s3217_s12 = smov 32   ;;  %s3218_s27 = smov 96   ;;  %vm356_vm2 = vcmask 261120  }
  0x17   :  { %v133_v13 = vunpack.c.0.s8 %v132_v11  ;;  %vm85_vm3 = vcmask 523264   ;;  %vm3219_vm4 = vmmov 0   ;;  %vm2535_vm5 = vcmask 785408   ;;  %s3221_s18 = smov [#allocation2]  }
  0x18   :  { %v3300_v18 = vsub.s32 0, %v135_v14  ;;  %v3317_v38 = vsub.s32 %v182_v36, %v135_v14  ;;  %v3323_v44 = vsub.s32 1, %v135_v14  ;;  %s2645_s19 = sshll.u32 %s3221_s18, 4  ;;  %vm2637_vm6 = vcmask 9216   ;;  %s2646_s19 = int_to_ptr.vmem [resolvable:$true] %s2645_s19 }
  0x19   :  { %v3297_v15 = vsub.s32 %v133_v13, %v135_v14  ;;  %s3189_s20 = scalar_lea.vmem %s2646_s19, 32  ;;  %p3194_p1 = scmp.lt.s32.totalorder %s2646_s19, %s2646_s19 }
  0x1a   :  { %p3190_p0 = scmp.ne.s32.totalorder %s2646_s19, %s3189_s20  ;;  %p3195_p2 = scmp.lt.s32.totalorder %s3189_s20, %s3189_s20 }
  0x1c   :  { %p3196_p3 = por %p3195_p2, %p3194_p1 }
  0x1e   :  { %p3197_p4 = pnand %p3196_p3, %p3190_p0 }
  0xe5   :  { %v123_v16 = vpop.f32.mrb[0].mxu0 }
  0xe6   :  { %v137_v17 = vrot.slane %v123_v16, %v3297_v15  ;;  %v3302_v19 = vpop.f32.mrb[1].mxu0 }
  0xe7   :  { %v127_v20 = vpop.f32.mrb[2].mxu0 }
  0xe8   :  { %v138_v21 = vcombine.high %v137_v17, %v137_v17  ;;  %v145_v22 = vrot.slane %v137_v17, %v3297_v15  ;;  %v128_v23 = vpop.f32.mrb[3].mxu0 }
  0xea   :  { %v152_v25 = vrot.slane %v138_v21, %v3297_v15  ;;  %v156_v26 = vrot.slane %v145_v22, %v3300_v18  ;;  %v276_v22 = vrot.slane %v3302_v19, 1 }
  0xec   :  { %v160_v28 = vrot.slane %v152_v25, %v3300_v18  ;;  %v163_v29 = vadd.f32 %v156_v26, %v33_v24  ;;  %v3349_v25 = vld [vmem:[%s4015_s4] ss:$0 sm:$0xff] }
  0xee   :  { %v164_v30 = vadd.f32 %v160_v28, %v34_v27  ;;  %2962 = vtanh.f32 %v163_v29 }
  0xf0   :  { %2964 = vtanh.f32 %v164_v30 }
  0xf8   :  { %v2963_v32 = vpop.eup %2962 }
  0xf9   :  { %v173_v33 = vmul.f32 %v2963_v32, %v2665_v31 }
  0xfa   :  { %v2965_v34 = vpop.eup %2964 }
  0xfb   :  { %175 = vadd.xlane.f32.xlu0 %v173_v33  ;;  %v174_v35 = vmul.f32 %v2965_v34, %v2665_v31 }
  0xff   :  { %177 = vadd.xlane.f32.xlu0 %v174_v35 }
 0x188   :  { %v176_v37 = vpop.xlane.xlu0 %175 }
 0x189   :  { %v186_v40 = vrot.slane %v176_v37, %v3317_v38 }
 0x18c   :  { %v178_v39 = vpop.xlane.xlu0 %177 }
 0x18d   :  { %v190_v41 = vrot.slane %v178_v39, %v3317_v38 }
 0x18f   :  { %v192_v42 = vsel %vm191_vm0, %v190_v41, %v186_v40 }
 0x190   :  { %v195_v43 = vsel %vm194_vm1, %v192_v42, -inf }
 0x191   :  { %196 = vmax.xlane.f32.xlu1 %v195_v43 }
 0x21e   :  { %v197_v45 = vpop.xlane.xlu1 %196 }
 0x21f   :  { %v202_v46 = vrot.slane %v197_v45, %v3300_v18  ;;  %v206_v47 = vrot.slane %v197_v45, %v3323_v44 }
 0x221   :  { %v209_v48 = vsub.f32 %v176_v37, %v202_v46  ;;  %v210_v49 = vsub.f32 %v178_v39, %v206_v47 }
 0x223   :  { %v211_v50 = vmul.f32 1.442695, %v209_v48  ;;  %v213_v51 = vmul.f32 1.442695, %v210_v49 }
 0x225   :  { %2966 = vpow2.f32 %v211_v50 }
 0x226   :  { %2968 = vpow2.f32 %v213_v51 }
 0x22f   :  { %v2967_v52 = vpop.eup %2966 }
 0x230   :  { %v2969_v53 = vpop.eup %2968  ;;  %218 = vperm.xlu1 %2864, %v2967_v52  }
 0x231   :  { %221 = vperm.xlu0 %2865, %v2969_v53  }
 0x2af   :  { %v219_v54 = vpop.permute.xlu1 %218 }
 0x2b0   :  { %v222_v55 = vpop.permute.xlu0 %221  ;;  %v226_v56 = vrot.slane %v219_v54, %v3317_v38  ;;  %v2880_v54 = vld [vmem:[%s4014_s3 + $0x40] ss:$8 sps:$4 sm:$0xff]  }
 0x2b1   :  { %v230_v57 = vrot.slane %v222_v55, %v3317_v38  ;;  %v2881_v55 = vld [vmem:[%s4014_s3 + $0x54] ss:$8 sps:$4 sm:$0xff]  }
 0x2b3   :  { %v231_v58 = vsel %vm191_vm0, %v230_v57, %v226_v56  ;;  %v2883_v56 = vld [vmem:[%s4014_s3 + $0x50] ss:$8 sps:$4 sm:$0xff]   ;;  %v2884_v57 = vld [vmem:[%s4014_s3 + $0x64] ss:$8 sps:$4 sm:$0xff]  }
 0x2b4   :  { %v233_v59 = vsel %vm194_vm1, %v231_v58, 0.0 }
 0x2b5   :  { %234 = vadd.xlane.f32.xlu1 %v233_v59 }
 0x342   :  { %v235_v60 = vpop.xlane.xlu1 %234 }
 0x343   :  { %v244_v61 = vrot.slane %v235_v60, %v3323_v44  ;;  %v240_v62 = vrot.slane %v235_v60, %v3300_v18  ;;  %v2886_v60 = vld [vmem:[%s4014_s3 + $0x60] ss:$8 sps:$4 sm:$0xff]  }
 0x345   :  { %2970 = vrcp.f32 %v244_v61  ;;  %v2887_v61 = vld [vmem:[%s4014_s3 + $0x74] ss:$8 sps:$4 sm:$0xff]  }
 0x346   :  { %2972 = vrcp.f32 %v240_v62 }
 0x34f   :  { %v2971_v63 = vpop.eup %2970 }
 0x350   :  { %v250_v0 = vmul.f32 %v2971_v63, %v2969_v53  ;;  %v2973_v1 = vpop.eup %2972  ;;  %v2878_v53 = vld [vmem:[%s4014_s3 + $0x44] ss:$8 sps:$4 sm:$0xff]  }
 0x351   :  { %v248_v3 = vmul.f32 %v2973_v1, %v2967_v52  ;;  %411 = vmatprep.subr.bf16.mxu1 %v2878_v53 }
 0x352   :  { %258 = vperm.xlu0 %2865, %v250_v0   ;;  %412 = vmatpush1.bf16.msra.mxu1 %v2880_v54  ;;  %v2889_v0 = vld [vmem:[%s4014_s3 + $0x70] ss:$8 sps:$4 sm:$0xff]  }
 0x353   :  { %413 = vmatprep.subr.bf16.mxu1 %v2881_v55 }
 0x356   :  { %253 = vperm.xlu0 %2865, %v248_v3   ;;  %414 = vmatpush1.bf16.msra.mxu1 %v2883_v56 }
 0x357   :  { %415 = vmatprep.subr.bf16.mxu1 %v2884_v57 }
 0x35a   :  { %416 = vmatpush1.bf16.msra.mxu1 %v2886_v60 }
 0x35b   :  { %417 = vmatprep.subr.bf16.mxu1 %v2887_v61 }
 0x35e   :  { %418 = vmatpush1.bf16.msra.mxu1 %v2889_v0 }
 0x3d1   :  { %v259_v5 = vpop.permute.xlu0 %258 }
 0x3d2   :  { %v262_v6 = vmul.f32 %v259_v5, %v3336_v4 }
 0x3d4   :  { %v269_v8 = vrot.slane %v262_v6, 4 }
 0x3d5   :  { %v254_v10 = vpop.permute.xlu0 %253 }
 0x3d6   :  { %v270_v11 = vadd.f32 %v269_v8, %v262_v6  ;;  %v261_v12 = vmul.f32 %v254_v10, %v3342_v7 }
 0x3d8   :  { %v271_v13 = vrot.slane %v270_v11, 2  ;;  %v263_v14 = vrot.slane %v261_v12, 4 }
 0x3da   :  { %v272_v16 = vadd.f32 %v271_v13, %v270_v11  ;;  %v264_v17 = vadd.f32 %v263_v14, %v261_v12 }
 0x3dc   :  { %v273_v20 = vrot.slane %v272_v16, 1  ;;  %v265_v21 = vrot.slane %v264_v17, 2 }
 0x3de   :  { %v274_v23 = vadd.f32 %v273_v20, %v272_v16  ;;  %v266_v24 = vadd.f32 %v265_v21, %v264_v17 }
 0x3e0   :  { %v280_v26 = vadd.f32 %v276_v22, %v274_v23  ;;  %v267_v27 = vrot.slane %v266_v24, 1 }
 0x3e2   :  { %v288_v28 = vadd.f32 %v3349_v25, %v280_v26  ;;  %v268_v29 = vadd.f32 %v267_v27, %v266_v24  ;;  %v2669_v26 = vld [vmem:[%s4011_s0 + $0x10] sm:$0xff] }
 0x3e4   :  { %2974 = vtanh.f32 %v288_v28  ;;  %v279_v30 = vadd.f32 %v268_v29, %v3302_v19  ;;  %v2668_v34 = vmul.f32 -1.442695, %v288_v28  ;;  %v2670_v29 = vld [vmem:[%s4011_s0 + $0x18] sm:$0xff] }
 0x3e6   :  { %v287_v31 = vadd.f32 %v3349_v25, %v279_v30 }
 0x3e8   :  { %2976 = vtanh.f32 %v287_v31  ;;  %v2667_v35 = vmul.f32 -1.442695, %v287_v31 }
 0x3e9   :  { %2978 = vpow2.f32 %v2668_v34 }
 0x3ea   :  { %2980 = vpow2.f32 %v2667_v35 }
 0x3ee   :  { %v2975_v32 = vpop.eup %2974 }
 0x3ef   :  { %309 = vrot.lane.b32.xlu1 %v2975_v32, %s3216_s11 }
 0x3f2   :  { %v2977_v33 = vpop.eup %2976 }
 0x3f3   :  { %307 = vrot.lane.b32.xlu0 %v2977_v33, %s3216_s11  ;;  %v2979_v36 = vpop.eup %2978  ;;  %v2689_v33 = vld [vmem:[%s4012_s1 + $0x1] ss:$0 sm:$0xff] }
 0x3f4   :  { %v296_v37 = vadd.f32 1.0, %v2979_v36  ;;  %v2981_v39 = vpop.eup %2980 }
 0x3f5   :  { %v295_v40 = vadd.f32 1.0, %v2981_v39 }
 0x3f6   :  { %2982 = vrcp.f32 %v296_v37 }
 0x3f7   :  { %2984 = vrcp.f32 %v295_v40 }
 0x400   :  { %v2983_v19 = vpop.eup %2982 }
 0x401   :  { %v2985_v43 = vpop.eup %2984  ;;  %v304_v47 = vmul.f32 0.0, %v2983_v19 }
 0x402   :  { %v303_v50 = vmul.f32 0.0, %v2985_v43 }
 0x461   :  { %v310_v41 = vpop.permute.xlu1 %309 }
 0x462   :  { %v314_v42 = vmul.f32 %v2983_v19, %v310_v41 }
 0x464   :  { %319 = vrot.lane.b32.xlu0 %v314_v42, %s3217_s12 }
 0x465   :  { %v308_v45 = vpop.permute.xlu0 %307 }
 0x466   :  { %v313_v46 = vmul.f32 %v2985_v43, %v308_v45 }
 0x468   :  { %317 = vrot.lane.b32.xlu0 %v313_v46, %s3217_s12 }
 0x4d6   :  { %v320_v48 = vpop.permute.xlu0 %319 }
 0x4d7   :  { %v3358_v49 = vadd.f32 %v320_v48, %v304_v47 }
 0x4d9   :  { %2986 = vtanh.f32 %v3358_v49  ;;  %v344_v59 = vrot.slane %v3358_v49, 7 }
 0x4da   :  { %v318_v51 = vpop.permute.xlu0 %317 }
 0x4db   :  { %v3361_v52 = vadd.f32 %v318_v51, %v303_v50 }
 0x4dd   :  { %2988 = vtanh.f32 %v3361_v52  ;;  %v345_v63 = vsel %vm191_vm0, %v344_v59, %v3361_v52 }
 0x4e3   :  { %v2987_v58 = vpop.eup %2986 }
 0x4e4   :  { %331 = vrot.lane.b32.xlu0 %v2987_v58, %s3216_s11 }
 0x4e7   :  { %v2989_v62 = vpop.eup %2988 }
 0x4e8   :  { %346 = vrot.lane.b32.xlu0 %v345_v63, %s3218_s27  ;;  %329 = vrot.lane.b32.xlu1 %v2989_v62, %s3216_s11 }
 0x556   :  { %v332_v1 = vpop.permute.xlu0 %331 }
 0x557   :  { %v336_v3 = vmul.f32 %v2983_v19, %v332_v1 }
 0x559   :  { %v351_v6 = vrot.slane %v336_v3, 7 }
 0x55a   :  { %v330_v5 = vpop.permute.xlu1 %329  ;;  %v347_v11 = vpop.permute.xlu0 %346 }
 0x55b   :  { %v335_v8 = vmul.f32 %v2985_v43, %v330_v5 }
 0x55d   :  { %v3395_v10 = vsel %vm191_vm0, %v351_v6, %v335_v8 }
 0x55e   :  { %353 = vrot.lane.b32.xlu1 %v3395_v10, %s3216_s11 }
 0x5d0   :  { %v354_v12 = vpop.permute.xlu1 %353 }
 0x5d1   :  { %v357_v13 = vsel %vm356_vm2, %v347_v11, %v354_v12 }
 0x5d2   :  { %v358_v14 = vpack.c.bf16 %v357_v13, %v357_v13 }
 0x5d4   :  { %2688 = vmatmul.mubr.msk.bf16.vlgmr.msra.gmra.mrb[0].mxu1 %vm85_vm3, %v358_v14 }
 0x5d5   :  { %1065 = vmatprep.mubr.bf16.mxu1 %v3213_v2 }
 0x6a7   :  { %v445_v16 = vpop.f32.mrb[0].mxu1 }
 0x6a8   :  { %v459_v17 = vrot.slane %v445_v16, %v3297_v15  ;;  %v3403_v20 = vpop.f32.mrb[1].mxu1 }
 0x6a9   :  { %v449_v21 = vpop.f32.mrb[2].mxu1 }
 0x6aa   :  { %v460_v22 = vcombine.high %v459_v17, %v459_v17  ;;  %v467_v23 = vrot.slane %v459_v17, %v3297_v15  ;;  %v450_v24 = vpop.f32.mrb[3].mxu1 }
 0x6ac   :  { %v474_v27 = vrot.slane %v460_v22, %v3297_v15  ;;  %v478_v28 = vrot.slane %v467_v23, %v3300_v18 }
 0x6ae   :  { %v482_v30 = vrot.slane %v474_v27, %v3300_v18  ;;  %v485_v31 = vadd.f32 %v2669_v26, %v478_v28  ;;  %v594_v27 = vrot.slane %v3403_v20, 1 }
 0x6b0   :  { %v486_v32 = vadd.f32 %v2670_v29, %v482_v30  ;;  %2990 = vtanh.f32 %v485_v31 }
 0x6b2   :  { %2992 = vtanh.f32 %v486_v32 }
 0x6ba   :  { %v2991_v34 = vpop.eup %2990 }
 0x6bb   :  { %v495_v35 = vmul.f32 %v2991_v34, %v2689_v33 }
 0x6bc   :  { %v2993_v36 = vpop.eup %2992 }
 0x6bd   :  { %497 = vadd.xlane.f32.xlu0 %v495_v35  ;;  %v496_v37 = vmul.f32 %v2993_v36, %v2689_v33 }
 0x6bf   :  { %499 = vadd.xlane.f32.xlu1 %v496_v37 }
 0x74a   :  { %v498_v39 = vpop.xlane.xlu0 %497 }
 0x74b   :  { %v506_v19 = vrot.slane %v498_v39, %v3317_v38 }
 0x74c   :  { %v500_v40 = vpop.xlane.xlu1 %499 }
 0x74d   :  { %v510_v41 = vrot.slane %v500_v40, %v3317_v38 }
 0x74f   :  { %v511_v42 = vsel %vm191_vm0, %v510_v41, %v506_v19 }
 0x750   :  { %v513_v43 = vsel %vm194_vm1, %v511_v42, -inf }
 0x751   :  { %514 = vmax.xlane.f32.xlu0 %v513_v43 }
 0x7de   :  { %v515_v45 = vpop.xlane.xlu0 %514 }
 0x7df   :  { %v520_v46 = vrot.slane %v515_v45, %v3300_v18  ;;  %v524_v47 = vrot.slane %v515_v45, %v3323_v44 }
 0x7e1   :  { %v527_v48 = vsub.f32 %v498_v39, %v520_v46  ;;  %v528_v50 = vsub.f32 %v500_v40, %v524_v47 }
 0x7e3   :  { %v529_v51 = vmul.f32 1.442695, %v527_v48  ;;  %v531_v53 = vmul.f32 1.442695, %v528_v50 }
 0x7e5   :  { %2994 = vpow2.f32 %v529_v51 }
 0x7e6   :  { %2996 = vpow2.f32 %v531_v53 }
 0x7ef   :  { %v2995_v54 = vpop.eup %2994 }
 0x7f0   :  { %v2997_v55 = vpop.eup %2996  ;;  %536 = vperm.xlu0 %2865, %v2995_v54  }
 0x7f1   :  { %539 = vperm.xlu1 %2864, %v2997_v55  }
 0x86f   :  { %v537_v56 = vpop.permute.xlu0 %536 }
 0x870   :  { %v540_v57 = vpop.permute.xlu1 %539  ;;  %v544_v58 = vrot.slane %v537_v56, %v3317_v38 }
 0x871   :  { %v548_v59 = vrot.slane %v540_v57, %v3317_v38 }
 0x873   :  { %v549_v60 = vsel %vm191_vm0, %v548_v59, %v544_v58  ;;  %v2890_v58 = vld [vmem:[%s4014_s3 + $0x80] ss:$8 sps:$4 sm:$0xff]   ;;  %v2895_v59 = vld [vmem:[%s4014_s3 + $0x94] ss:$8 sps:$4 sm:$0xff]  }
 0x874   :  { %v551_v61 = vsel %vm194_vm1, %v549_v60, 0.0  ;;  %v2898_v60 = vld [vmem:[%s4014_s3 + $0xa4] ss:$8 sps:$4 sm:$0xff]  }
 0x875   :  { %552 = vadd.xlane.f32.xlu1 %v551_v61 }
 0x902   :  { %v553_v62 = vpop.xlane.xlu1 %552 }
 0x903   :  { %v562_v63 = vrot.slane %v553_v62, %v3323_v44  ;;  %v558_v0 = vrot.slane %v553_v62, %v3300_v18  ;;  %v2896_v62 = vld [vmem:[%s4014_s3 + $0xa0] ss:$8 sps:$4 sm:$0xff]  }
 0x905   :  { %2998 = vrcp.f32 %v562_v63  ;;  %v2901_v63 = vld [vmem:[%s4014_s3 + $0xb4] ss:$8 sps:$4 sm:$0xff]  }
 0x906   :  { %3000 = vrcp.f32 %v558_v0 }
 0x90f   :  { %v2999_v1 = vpop.eup %2998 }
 0x910   :  { %v568_v3 = vmul.f32 %v2999_v1, %v2997_v55  ;;  %v3001_v5 = vpop.eup %3000 }
 0x911   :  { %v566_v6 = vmul.f32 %v3001_v5, %v2995_v54 }
 0x912   :  { %576 = vperm.xlu0 %2865, %v568_v3   ;;  %v2899_v3 = vld [vmem:[%s4014_s3 + $0xb0] ss:$8 sps:$4 sm:$0xff]  }
 0x916   :  { %571 = vperm.xlu0 %2865, %v566_v6  }
 0x991   :  { %v577_v8 = vpop.permute.xlu0 %576 }
 0x992   :  { %v580_v11 = vmul.f32 %v577_v8, %v3336_v4 }
 0x994   :  { %v587_v12 = vrot.slane %v580_v11, 4 }
 0x995   :  { %v572_v13 = vpop.permute.xlu0 %571 }
 0x996   :  { %v588_v14 = vadd.f32 %v587_v12, %v580_v11  ;;  %v579_v16 = vmul.f32 %v572_v13, %v3342_v7 }
 0x998   :  { %v589_v17 = vrot.slane %v588_v14, 2  ;;  %v581_v21 = vrot.slane %v579_v16, 4 }
 0x99a   :  { %v590_v22 = vadd.f32 %v589_v17, %v588_v14  ;;  %v582_v23 = vadd.f32 %v581_v21, %v579_v16 }
 0x99c   :  { %v591_v24 = vrot.slane %v590_v22, 1  ;;  %v583_v26 = vrot.slane %v582_v23, 2 }
 0x99e   :  { %v592_v28 = vadd.f32 %v591_v24, %v590_v22  ;;  %v584_v29 = vadd.f32 %v583_v26, %v582_v23 }
 0x9a0   :  { %v598_v30 = vadd.f32 %v594_v27, %v592_v28  ;;  %v585_v31 = vrot.slane %v584_v29, 1 }
 0x9a2   :  { %v600_v32 = vadd.f32 %v3349_v25, %v598_v30  ;;  %v586_v33 = vadd.f32 %v585_v31, %v584_v29  ;;  %v2692_v31 = vld [vmem:[%s4011_s0 + $0x20] sm:$0xff] }
 0x9a4   :  { %3002 = vtanh.f32 %v600_v32  ;;  %v597_v34 = vadd.f32 %v586_v33, %v3403_v20  ;;  %v2691_v39 = vmul.f32 -1.442695, %v600_v32 }
 0x9a6   :  { %v599_v35 = vadd.f32 %v3349_v25, %v597_v34  ;;  %v2693_v34 = vld [vmem:[%s4011_s0 + $0x28] sm:$0xff] }
 0x9a8   :  { %3004 = vtanh.f32 %v599_v35  ;;  %v2690_v40 = vmul.f32 -1.442695, %v599_v35 }
 0x9a9   :  { %3006 = vpow2.f32 %v2691_v39  ;;  %v2712_v39 = vld [vmem:[%s4012_s1 + $0x2] ss:$0 sm:$0xff] }
 0x9aa   :  { %3008 = vpow2.f32 %v2690_v40 }
 0x9ae   :  { %v3003_v36 = vpop.eup %3002 }
 0x9af   :  { %621 = vrot.lane.b32.xlu0 %v3003_v36, %s3216_s11 }
 0x9b2   :  { %v3005_v37 = vpop.eup %3004 }
 0x9b3   :  { %619 = vrot.lane.b32.xlu0 %v3005_v37, %s3216_s11  ;;  %v3007_v19 = vpop.eup %3006 }
 0x9b4   :  { %v608_v41 = vadd.f32 1.0, %v3007_v19  ;;  %v3009_v42 = vpop.eup %3008 }
 0x9b5   :  { %v607_v43 = vadd.f32 1.0, %v3009_v42 }
 0x9b6   :  { %3010 = vrcp.f32 %v608_v41 }
 0x9b7   :  { %3012 = vrcp.f32 %v607_v43 }
 0x9c0   :  { %v3011_v20 = vpop.eup %3010 }
 0x9c1   :  { %v3013_v47 = vpop.eup %3012  ;;  %v616_v51 = vmul.f32 %v3011_v20, %v3358_v49  ;;  %v2892_v49 = vld [vmem:[%s4014_s3 + $0x84] ss:$8 sps:$4 sm:$0xff]  }
 0x9c2   :  { %v615_v55 = vmul.f32 %v3013_v47, %v3361_v52  ;;  %722 = vmatprep.subr.bf16.mxu0 %v2892_v49  ;;  %v2893_v52 = vld [vmem:[%s4014_s3 + $0x90] ss:$8 sps:$4 sm:$0xff]  }
 0x9c3   :  { %723 = vmatpush1.bf16.msra.mxu0 %v2890_v58 }
 0x9c4   :  { %724 = vmatprep.subr.bf16.mxu0 %v2895_v59 }
 0x9c7   :  { %725 = vmatpush1.bf16.msra.mxu0 %v2893_v52 }
 0x9c8   :  { %726 = vmatprep.subr.bf16.mxu0 %v2898_v60 }
 0x9cb   :  { %727 = vmatpush1.bf16.msra.mxu0 %v2896_v62 }
 0x9cc   :  { %728 = vmatprep.subr.bf16.mxu0 %v2901_v63 }
 0x9cf   :  { %729 = vmatpush1.bf16.msra.mxu0 %v2899_v3 }
 0xa21   :  { %v622_v45 = vpop.permute.xlu0 %621 }
 0xa22   :  { %v626_v46 = vmul.f32 %v3011_v20, %v622_v45 }
 0xa24   :  { %631 = vrot.lane.b32.xlu0 %v626_v46, %s3217_s12 }
 0xa25   :  { %v620_v48 = vpop.permute.xlu0 %619 }
 0xa26   :  { %v625_v50 = vmul.f32 %v3013_v47, %v620_v48 }
 0xa28   :  { %629 = vrot.lane.b32.xlu0 %v625_v50, %s3217_s12 }
 0xa96   :  { %v632_v53 = vpop.permute.xlu0 %631 }
 0xa97   :  { %v3441_v54 = vadd.f32 %v632_v53, %v616_v51 }
 0xa99   :  { %3014 = vtanh.f32 %v3441_v54  ;;  %v656_v1 = vrot.slane %v3441_v54, 7 }
 0xa9a   :  { %v630_v56 = vpop.permute.xlu0 %629 }
 0xa9b   :  { %v3445_v57 = vadd.f32 %v630_v56, %v615_v55 }
 0xa9d   :  { %3016 = vtanh.f32 %v3445_v57  ;;  %v657_v5 = vsel %vm191_vm0, %v656_v1, %v3445_v57 }
 0xaa3   :  { %v3015_v61 = vpop.eup %3014 }
 0xaa4   :  { %643 = vrot.lane.b32.xlu0 %v3015_v61, %s3216_s11 }
 0xaa7   :  { %v3017_v0 = vpop.eup %3016 }
 0xaa8   :  { %641 = vrot.lane.b32.xlu0 %v3017_v0, %s3216_s11 }
 0xaac   :  { %658 = vrot.lane.b32.xlu0 %v657_v5, %s3218_s27 }
 0xb16   :  { %v644_v6 = vpop.permute.xlu0 %643 }
 0xb17   :  { %v648_v8 = vmul.f32 %v3011_v20, %v644_v6 }
 0xb19   :  { %v663_v12 = vrot.slane %v648_v8, 7 }
 0xb1a   :  { %v642_v11 = vpop.permute.xlu0 %641 }
 0xb1b   :  { %v647_v13 = vmul.f32 %v3013_v47, %v642_v11 }
 0xb1d   :  { %v664_v14 = vsel %vm191_vm0, %v663_v12, %v647_v13 }
 0xb1e   :  { %665 = vrot.lane.b32.xlu1 %v664_v14, %s3216_s11  ;;  %v659_v16 = vpop.permute.xlu0 %658 }
 0xb90   :  { %v3480_v17 = vpop.permute.xlu1 %665 }
 0xb91   :  { %v668_v21 = vsel %vm356_vm2, %v659_v16, %v3480_v17 }
 0xb92   :  { %v669_v22 = vpack.c.bf16 %v668_v21, %v668_v21 }
 0xb94   :  { %2711 = vmatmul.mubr.msk.bf16.vlgmr.msra.gmra.mrb[4].mxu0 %vm85_vm3, %v669_v22 }
 0xb95   :  { %1376 = vmatprep.mubr.bf16.mxu0 %v3213_v2 }
 0xc67   :  { %v756_v23 = vpop.f32.mrb[4].mxu0 }
 0xc68   :  { %v770_v24 = vrot.slane %v756_v23, %v3297_v15  ;;  %v3487_v26 = vpop.f32.mrb[5].mxu0 }
 0xc69   :  { %v760_v27 = vpop.f32.mrb[6].mxu0 }
 0xc6a   :  { %v771_v28 = vcombine.high %v770_v24, %v770_v24  ;;  %v778_v29 = vrot.slane %v770_v24, %v3297_v15  ;;  %v761_v30 = vpop.f32.mrb[7].mxu0 }
 0xc6c   :  { %v785_v32 = vrot.slane %v771_v28, %v3297_v15  ;;  %v789_v33 = vrot.slane %v778_v29, %v3300_v18 }
 0xc6e   :  { %v793_v35 = vrot.slane %v785_v32, %v3300_v18  ;;  %v796_v36 = vadd.f32 %v2692_v31, %v789_v33  ;;  %v905_v33 = vrot.slane %v3487_v26, 1 }
 0xc70   :  { %v797_v37 = vadd.f32 %v2693_v34, %v793_v35  ;;  %3018 = vtanh.f32 %v796_v36 }
 0xc72   :  { %3020 = vtanh.f32 %v797_v37 }
 0xc7a   :  { %v3019_v40 = vpop.eup %3018 }
 0xc7b   :  { %v806_v19 = vmul.f32 %v3019_v40, %v2712_v39 }
 0xc7c   :  { %v3021_v41 = vpop.eup %3020 }
 0xc7d   :  { %808 = vadd.xlane.f32.xlu0 %v806_v19  ;;  %v807_v42 = vmul.f32 %v3021_v41, %v2712_v39 }
 0xc7f   :  { %810 = vadd.xlane.f32.xlu1 %v807_v42 }
 0xd0a   :  { %v809_v43 = vpop.xlane.xlu0 %808 }
 0xd0b   :  { %v817_v45 = vrot.slane %v809_v43, %v3317_v38 }
 0xd0c   :  { %v811_v20 = vpop.xlane.xlu1 %810 }
 0xd0d   :  { %v821_v46 = vrot.slane %v811_v20, %v3317_v38 }
 0xd0f   :  { %v822_v47 = vsel %vm191_vm0, %v821_v46, %v817_v45 }
 0xd10   :  { %v824_v48 = vsel %vm194_vm1, %v822_v47, -inf }
 0xd11   :  { %825 = vmax.xlane.f32.xlu0 %v824_v48 }
 0xd9e   :  { %v826_v50 = vpop.xlane.xlu0 %825 }
 0xd9f   :  { %v831_v51 = vrot.slane %v826_v50, %v3300_v18  ;;  %v835_v53 = vrot.slane %v826_v50, %v3323_v44 }
 0xda1   :  { %v838_v55 = vsub.f32 %v809_v43, %v831_v51  ;;  %v839_v56 = vsub.f32 %v811_v20, %v835_v53 }
 0xda3   :  { %v840_v58 = vmul.f32 1.442695, %v838_v55  ;;  %v842_v49 = vmul.f32 1.442695, %v839_v56 }
 0xda5   :  { %3022 = vpow2.f32 %v840_v58 }
 0xda6   :  { %3024 = vpow2.f32 %v842_v49 }
 0xdaf   :  { %v3023_v59 = vpop.eup %3022 }
 0xdb0   :  { %v3025_v52 = vpop.eup %3024  ;;  %847 = vperm.xlu0 %2865, %v3023_v59  }
 0xdb1   :  { %850 = vperm.xlu1 %2864, %v3025_v52  }
 0xe2f   :  { %v848_v60 = vpop.permute.xlu0 %847 }
 0xe30   :  { %v851_v61 = vpop.permute.xlu1 %850  ;;  %v855_v62 = vrot.slane %v848_v60, %v3317_v38 }
 0xe31   :  { %v859_v63 = vrot.slane %v851_v61, %v3317_v38 }
 0xe33   :  { %v860_v0 = vsel %vm191_vm0, %v859_v63, %v855_v62  ;;  %v2902_v63 = vld [vmem:[%s4014_s3 + $0xc0] ss:$8 sps:$4 sm:$0xff]  }
 0xe34   :  { %v862_v1 = vsel %vm194_vm1, %v860_v0, 0.0  ;;  %v2907_v0 = vld [vmem:[%s4014_s3 + $0xd4] ss:$8 sps:$4 sm:$0xff]  }
 0xe35   :  { %863 = vadd.xlane.f32.xlu0 %v862_v1  ;;  %v2910_v1 = vld [vmem:[%s4014_s3 + $0xe4] ss:$8 sps:$4 sm:$0xff]  }
 0xec2   :  { %v864_v3 = vpop.xlane.xlu0 %863 }
 0xec3   :  { %v873_v5 = vrot.slane %v864_v3, %v3323_v44  ;;  %v869_v6 = vrot.slane %v864_v3, %v3300_v18 }
 0xec5   :  { %3026 = vrcp.f32 %v873_v5  ;;  %v2908_v5 = vld [vmem:[%s4014_s3 + $0xe0] ss:$8 sps:$4 sm:$0xff]  }
 0xec6   :  { %3028 = vrcp.f32 %v869_v6  ;;  %v2913_v6 = vld [vmem:[%s4014_s3 + $0xf4] ss:$8 sps:$4 sm:$0xff]  }
 0xecf   :  { %v3027_v8 = vpop.eup %3026 }
 0xed0   :  { %v879_v11 = vmul.f32 %v3027_v8, %v3025_v52  ;;  %v3029_v12 = vpop.eup %3028 }
 0xed1   :  { %v877_v13 = vmul.f32 %v3029_v12, %v3023_v59  ;;  %v2911_v12 = vld [vmem:[%s4014_s3 + $0xf0] ss:$8 sps:$4 sm:$0xff]  }
 0xed2   :  { %887 = vperm.xlu1 %2864, %v879_v11  }
 0xed6   :  { %882 = vperm.xlu1 %2864, %v877_v13  }
 0xf51   :  { %v888_v14 = vpop.permute.xlu1 %887 }
 0xf52   :  { %v891_v16 = vmul.f32 %v888_v14, %v3336_v4 }
 0xf54   :  { %v898_v21 = vrot.slane %v891_v16, 4 }
 0xf55   :  { %v883_v22 = vpop.permute.xlu1 %882 }
 0xf56   :  { %v899_v23 = vadd.f32 %v898_v21, %v891_v16  ;;  %v890_v24 = vmul.f32 %v883_v22, %v3342_v7 }
 0xf58   :  { %v900_v27 = vrot.slane %v899_v23, 2  ;;  %v892_v28 = vrot.slane %v890_v24, 4 }
 0xf5a   :  { %v901_v29 = vadd.f32 %v900_v27, %v899_v23  ;;  %v893_v30 = vadd.f32 %v892_v28, %v890_v24 }
 0xf5c   :  { %v902_v31 = vrot.slane %v901_v29, 1  ;;  %v894_v32 = vrot.slane %v893_v30, 2 }
 0xf5e   :  { %v903_v34 = vadd.f32 %v902_v31, %v901_v29  ;;  %v895_v35 = vadd.f32 %v894_v32, %v893_v30 }
 0xf60   :  { %v909_v36 = vadd.f32 %v905_v33, %v903_v34  ;;  %v896_v37 = vrot.slane %v895_v35, 1 }
 0xf62   :  { %v911_v39 = vadd.f32 %v3349_v25, %v909_v36  ;;  %v897_v40 = vadd.f32 %v896_v37, %v895_v35 }
 0xf64   :  { %3030 = vtanh.f32 %v911_v39  ;;  %v908_v19 = vadd.f32 %v897_v40, %v3487_v26  ;;  %v2714_v20 = vmul.f32 -1.442695, %v911_v39  ;;  %v2715_v39 = vld [vmem:[%s4011_s0 + $0x30] sm:$0xff] }
 0xf66   :  { %v910_v41 = vadd.f32 %v3349_v25, %v908_v19 }
 0xf68   :  { %3032 = vtanh.f32 %v910_v41  ;;  %v2713_v45 = vmul.f32 -1.442695, %v910_v41  ;;  %v2716_v41 = vld [vmem:[%s4011_s0 + $0x38] sm:$0xff] }
 0xf69   :  { %3034 = vpow2.f32 %v2714_v20 }
 0xf6a   :  { %3036 = vpow2.f32 %v2713_v45  ;;  %v2735_v45 = vld [vmem:[%s4012_s1 + $0x3] ss:$0 sm:$0xff] }
 0xf6e   :  { %v3031_v42 = vpop.eup %3030 }
 0xf6f   :  { %932 = vrot.lane.b32.xlu1 %v3031_v42, %s3216_s11 }
 0xf72   :  { %v3033_v43 = vpop.eup %3032 }
 0xf73   :  { %930 = vrot.lane.b32.xlu1 %v3033_v43, %s3216_s11  ;;  %v3035_v46 = vpop.eup %3034 }
 0xf74   :  { %v919_v47 = vadd.f32 1.0, %v3035_v46  ;;  %v3037_v48 = vpop.eup %3036 }
 0xf75   :  { %v918_v50 = vadd.f32 1.0, %v3037_v48 }
 0xf76   :  { %3038 = vrcp.f32 %v919_v47 }
 0xf77   :  { %3040 = vrcp.f32 %v918_v50 }
 0xf80   :  { %v3039_v26 = vpop.eup %3038 }
 0xf81   :  { %v3041_v55 = vpop.eup %3040  ;;  %v927_v49 = vmul.f32 %v3039_v26, %v3441_v54  ;;  %v2904_v54 = vld [vmem:[%s4014_s3 + $0xc4] ss:$8 sps:$4 sm:$0xff]  }
 0xf82   :  { %v926_v60 = vmul.f32 %v3041_v55, %v3445_v57  ;;  %1033 = vmatprep.subr.bf16.mxu1 %v2904_v54  ;;  %v2905_v57 = vld [vmem:[%s4014_s3 + $0xd0] ss:$8 sps:$4 sm:$0xff]  }
 0xf83   :  { %1034 = vmatpush1.bf16.msra.mxu1 %v2902_v63 }
 0xf84   :  { %1035 = vmatprep.subr.bf16.mxu1 %v2907_v0 }
 0xf87   :  { %1036 = vmatpush1.bf16.msra.mxu1 %v2905_v57 }
 0xf88   :  { %1037 = vmatprep.subr.bf16.mxu1 %v2910_v1 }
 0xf8b   :  { %1038 = vmatpush1.bf16.msra.mxu1 %v2908_v5 }
 0xf8c   :  { %1039 = vmatprep.subr.bf16.mxu1 %v2913_v6 }
 0xf8f   :  { %1040 = vmatpush1.bf16.msra.mxu1 %v2911_v12 }
 0xfe1   :  { %v933_v51 = vpop.permute.xlu1 %932 }
 0xfe2   :  { %v937_v53 = vmul.f32 %v3039_v26, %v933_v51 }
 0xfe4   :  { %942 = vrot.lane.b32.xlu1 %v937_v53, %s3217_s12 }
 0xfe5   :  { %v931_v56 = vpop.permute.xlu1 %930 }
 0xfe6   :  { %v936_v58 = vmul.f32 %v3041_v55, %v931_v56 }
 0xfe8   :  { %940 = vrot.lane.b32.xlu0 %v936_v58, %s3217_s12 }
0x1056   :  { %v943_v59 = vpop.permute.xlu1 %942 }
0x1057   :  { %v3525_v52 = vadd.f32 %v943_v59, %v927_v49 }
0x1059   :  { %3042 = vtanh.f32 %v3525_v52  ;;  %v967_v11 = vrot.slane %v3525_v52, 7 }
0x105a   :  { %v941_v61 = vpop.permute.xlu0 %940 }
0x105b   :  { %v3529_v62 = vadd.f32 %v941_v61, %v926_v60 }
0x105d   :  { %3044 = vtanh.f32 %v3529_v62  ;;  %v968_v13 = vsel %vm191_vm0, %v967_v11, %v3529_v62 }
0x1063   :  { %v3043_v3 = vpop.eup %3042 }
0x1064   :  { %954 = vrot.lane.b32.xlu1 %v3043_v3, %s3216_s11 }
0x1067   :  { %v3045_v8 = vpop.eup %3044 }
0x1068   :  { %952 = vrot.lane.b32.xlu1 %v3045_v8, %s3216_s11 }
0x106c   :  { %969 = vrot.lane.b32.xlu1 %v968_v13, %s3218_s27 }
0x10d6   :  { %v955_v14 = vpop.permute.xlu1 %954 }
0x10d7   :  { %v959_v16 = vmul.f32 %v3039_v26, %v955_v14 }
0x10d9   :  { %v974_v22 = vrot.slane %v959_v16, 7 }
0x10da   :  { %v953_v21 = vpop.permute.xlu1 %952 }
0x10db   :  { %v958_v23 = vmul.f32 %v3041_v55, %v953_v21 }
0x10dd   :  { %v3563_v24 = vsel %vm191_vm0, %v974_v22, %v958_v23 }
0x10de   :  { %976 = vrot.lane.b32.xlu1 %v3563_v24, %s3216_s11  ;;  %v970_v27 = vpop.permute.xlu1 %969 }
0x1150   :  { %v977_v28 = vpop.permute.xlu1 %976 }
0x1151   :  { %v979_v29 = vsel %vm356_vm2, %v970_v27, %v977_v28 }
0x1152   :  { %v980_v30 = vpack.c.bf16 %v979_v29, %v979_v29 }
0x1154   :  { %2734 = vmatmul.mubr.msk.bf16.vlgmr.msra.gmra.mrb[4].mxu1 %vm85_vm3, %v980_v30 }
0x1155   :  { %1687 = vmatprep.mubr.bf16.mxu1 %v3213_v2 }
0x1227   :  { %v1067_v31 = vpop.f32.mrb[4].mxu1 }
0x1228   :  { %v1081_v32 = vrot.slane %v1067_v31, %v3297_v15  ;;  %v3571_v33 = vpop.f32.mrb[5].mxu1 }
0x1229   :  { %v1071_v34 = vpop.f32.mrb[6].mxu1 }
0x122a   :  { %v1082_v35 = vcombine.high %v1081_v32, %v1081_v32  ;;  %v1089_v36 = vrot.slane %v1081_v32, %v3297_v15  ;;  %v1072_v37 = vpop.f32.mrb[7].mxu1 }
0x122c   :  { %v1096_v40 = vrot.slane %v1082_v35, %v3297_v15  ;;  %v1100_v19 = vrot.slane %v1089_v36, %v3300_v18 }
0x122e   :  { %v1104_v42 = vrot.slane %v1096_v40, %v3300_v18  ;;  %v1107_v43 = vadd.f32 %v2715_v39, %v1100_v19 }
0x1230   :  { %v1108_v20 = vadd.f32 %v2716_v41, %v1104_v42  ;;  %3046 = vtanh.f32 %v1107_v43  ;;  %v1216_v41 = vrot.slane %v3571_v33, 1 }
0x1232   :  { %3048 = vtanh.f32 %v1108_v20 }
0x123a   :  { %v3047_v46 = vpop.eup %3046 }
0x123b   :  { %v1117_v47 = vmul.f32 %v3047_v46, %v2735_v45 }
0x123c   :  { %v3049_v48 = vpop.eup %3048 }
0x123d   :  { %1119 = vadd.xlane.f32.xlu1 %v1117_v47  ;;  %v1118_v50 = vmul.f32 %v3049_v48, %v2735_v45 }
0x123f   :  { %1121 = vadd.xlane.f32.xlu0 %v1118_v50 }
0x12ca   :  { %v1120_v26 = vpop.xlane.xlu1 %1119 }
0x12cb   :  { %v1128_v53 = vrot.slane %v1120_v26, %v3317_v38 }
0x12cc   :  { %v1122_v51 = vpop.xlane.xlu0 %1121 }
0x12cd   :  { %v1132_v55 = vrot.slane %v1122_v51, %v3317_v38 }
0x12cf   :  { %v1133_v56 = vsel %vm191_vm0, %v1132_v55, %v1128_v53 }
0x12d0   :  { %v1135_v58 = vsel %vm194_vm1, %v1133_v56, -inf }
0x12d1   :  { %1136 = vmax.xlane.f32.xlu1 %v1135_v58 }
0x135e   :  { %v1137_v49 = vpop.xlane.xlu1 %1136 }
0x135f   :  { %v1142_v59 = vrot.slane %v1137_v49, %v3300_v18  ;;  %v1146_v60 = vrot.slane %v1137_v49, %v3323_v44 }
0x1361   :  { %v1149_v61 = vsub.f32 %v1120_v26, %v1142_v59  ;;  %v1150_v63 = vsub.f32 %v1122_v51, %v1146_v60 }
0x1363   :  { %v1151_v54 = vmul.f32 1.442695, %v1149_v61  ;;  %v1153_v0 = vmul.f32 1.442695, %v1150_v63 }
0x1365   :  { %3050 = vpow2.f32 %v1151_v54 }
0x1366   :  { %3052 = vpow2.f32 %v1153_v0 }
0x136f   :  { %v3051_v57 = vpop.eup %3050 }
0x1370   :  { %v3053_v1 = vpop.eup %3052  ;;  %1158 = vperm.xlu0 %2865, %v3051_v57  }
0x1371   :  { %1161 = vperm.xlu1 %2864, %v3053_v1  }
0x13ef   :  { %v1159_v3 = vpop.permute.xlu0 %1158 }
0x13f0   :  { %v1162_v5 = vpop.permute.xlu1 %1161  ;;  %v1166_v6 = vrot.slane %v1159_v3, %v3317_v38 }
0x13f1   :  { %v1170_v8 = vrot.slane %v1162_v5, %v3317_v38  ;;  %v2914_v5 = vld [vmem:[%s4014_s3 + $0x100] ss:$8 sps:$4 sm:$0xff]  }
0x13f3   :  { %v1171_v11 = vsel %vm191_vm0, %v1170_v8, %v1166_v6  ;;  %v2919_v6 = vld [vmem:[%s4014_s3 + $0x114] ss:$8 sps:$4 sm:$0xff]   ;;  %v2922_v8 = vld [vmem:[%s4014_s3 + $0x124] ss:$8 sps:$4 sm:$0xff]  }
0x13f4   :  { %v1173_v12 = vsel %vm194_vm1, %v1171_v11, 0.0 }
0x13f5   :  { %1174 = vadd.xlane.f32.xlu1 %v1173_v12  ;;  %v2920_v12 = vld [vmem:[%s4014_s3 + $0x120] ss:$8 sps:$4 sm:$0xff]  }
0x1482   :  { %v1175_v13 = vpop.xlane.xlu1 %1174 }
0x1483   :  { %v1184_v14 = vrot.slane %v1175_v13, %v3323_v44  ;;  %v1180_v16 = vrot.slane %v1175_v13, %v3300_v18  ;;  %v2925_v13 = vld [vmem:[%s4014_s3 + $0x134] ss:$8 sps:$4 sm:$0xff]  }
0x1485   :  { %3054 = vrcp.f32 %v1184_v14 }
0x1486   :  { %3056 = vrcp.f32 %v1180_v16 }
0x148f   :  { %v3055_v21 = vpop.eup %3054 }
0x1490   :  { %v1190_v22 = vmul.f32 %v3055_v21, %v3053_v1  ;;  %v3057_v23 = vpop.eup %3056  ;;  %v2923_v21 = vld [vmem:[%s4014_s3 + $0x130] ss:$8 sps:$4 sm:$0xff]  }
0x1491   :  { %v1188_v27 = vmul.f32 %v3057_v23, %v3051_v57 }
0x1492   :  { %1198 = vperm.xlu0 %2865, %v1190_v22  }
0x1496   :  { %1193 = vperm.xlu0 %2865, %v1188_v27  }
0x1511   :  { %v1199_v28 = vpop.permute.xlu0 %1198 }
0x1512   :  { %v1202_v29 = vmul.f32 %v1199_v28, %v3336_v4 }
0x1514   :  { %v1209_v30 = vrot.slane %v1202_v29, 4 }
0x1515   :  { %v1194_v31 = vpop.permute.xlu0 %1193 }
0x1516   :  { %v1210_v32 = vadd.f32 %v1209_v30, %v1202_v29  ;;  %v1201_v34 = vmul.f32 %v1194_v31, %v3342_v7 }
0x1518   :  { %v1211_v35 = vrot.slane %v1210_v32, 2  ;;  %v1203_v36 = vrot.slane %v1201_v34, 4 }
0x151a   :  { %v1212_v37 = vadd.f32 %v1211_v35, %v1210_v32  ;;  %v1204_v39 = vadd.f32 %v1203_v36, %v1201_v34 }
0x151c   :  { %v1213_v40 = vrot.slane %v1212_v37, 1  ;;  %v1205_v19 = vrot.slane %v1204_v39, 2 }
0x151e   :  { %v1214_v42 = vadd.f32 %v1213_v40, %v1212_v37  ;;  %v1206_v43 = vadd.f32 %v1205_v19, %v1204_v39 }
0x1520   :  { %v1220_v20 = vadd.f32 %v1216_v41, %v1214_v42  ;;  %v1207_v45 = vrot.slane %v1206_v43, 1 }
0x1522   :  { %v1222_v46 = vadd.f32 %v3349_v25, %v1220_v20  ;;  %v1208_v4 = vadd.f32 %v1207_v45, %v1206_v43  ;;  %v2738_v20 = vld [vmem:[%s4011_s0 + $0x40] sm:$0xff] }
0x1524   :  { %3058 = vtanh.f32 %v1222_v46  ;;  %v1219_v47 = vadd.f32 %v1208_v4, %v3571_v33  ;;  %v2737_v26 = vmul.f32 -1.442695, %v1222_v46  ;;  %v2739_v4 = vld [vmem:[%s4011_s0 + $0x48] sm:$0xff] }
0x1526   :  { %v1221_v7 = vadd.f32 %v3349_v25, %v1219_v47 }
0x1528   :  { %3060 = vtanh.f32 %v1221_v7  ;;  %v2736_v51 = vmul.f32 -1.442695, %v1221_v7 }
0x1529   :  { %3062 = vpow2.f32 %v2737_v26 }
0x152a   :  { %3064 = vpow2.f32 %v2736_v51 }
0x152e   :  { %v3059_v48 = vpop.eup %3058 }
0x152f   :  { %1243 = vrot.lane.b32.xlu0 %v3059_v48, %s3216_s11 }
0x1532   :  { %v3061_v50 = vpop.eup %3060 }
0x1533   :  { %1241 = vrot.lane.b32.xlu0 %v3061_v50, %s3216_s11  ;;  %v3063_v53 = vpop.eup %3062  ;;  %v2758_v50 = vld [vmem:[%s4012_s1 + $0x4] ss:$0 sm:$0xff] }
0x1534   :  { %v1230_v55 = vadd.f32 1.0, %v3063_v53  ;;  %v3065_v56 = vpop.eup %3064 }
0x1535   :  { %v1229_v58 = vadd.f32 1.0, %v3065_v56 }
0x1536   :  { %3066 = vrcp.f32 %v1230_v55 }
0x1537   :  { %3068 = vrcp.f32 %v1229_v58 }
0x1540   :  { %v3067_v33 = vpop.eup %3066 }
0x1541   :  { %v3069_v59 = vpop.eup %3068  ;;  %v1238_v63 = vmul.f32 %v3067_v33, %v3525_v52  ;;  %v2916_v52 = vld [vmem:[%s4014_s3 + $0x104] ss:$8 sps:$4 sm:$0xff]  }
0x1542   :  { %v1237_v57 = vmul.f32 %v3069_v59, %v3529_v62  ;;  %1344 = vmatprep.subr.bf16.mxu0 %v2916_v52  ;;  %v2917_v62 = vld [vmem:[%s4014_s3 + $0x110] ss:$8 sps:$4 sm:$0xff]  }
0x1543   :  { %1345 = vmatpush1.bf16.msra.mxu0 %v2914_v5 }
0x1544   :  { %1346 = vmatprep.subr.bf16.mxu0 %v2919_v6 }
0x1547   :  { %1347 = vmatpush1.bf16.msra.mxu0 %v2917_v62 }
0x1548   :  { %1348 = vmatprep.subr.bf16.mxu0 %v2922_v8 }
0x154b   :  { %1349 = vmatpush1.bf16.msra.mxu0 %v2920_v12 }
0x154c   :  { %1350 = vmatprep.subr.bf16.mxu0 %v2925_v13 }
0x154f   :  { %1351 = vmatpush1.bf16.msra.mxu0 %v2923_v21 }
0x15a1   :  { %v1244_v49 = vpop.permute.xlu0 %1243 }
0x15a2   :  { %v1248_v25 = vmul.f32 %v3067_v33, %v1244_v49 }
0x15a4   :  { %1253 = vrot.lane.b32.xlu0 %v1248_v25, %s3217_s12 }
0x15a5   :  { %v1242_v60 = vpop.permute.xlu0 %1241 }
0x15a6   :  { %v1247_v61 = vmul.f32 %v3069_v59, %v1242_v60 }
0x15a8   :  { %1251 = vrot.lane.b32.xlu0 %v1247_v61, %s3217_s12 }
0x1616   :  { %v1254_v54 = vpop.permute.xlu0 %1253 }
0x1617   :  { %v3609_v0 = vadd.f32 %v1254_v54, %v1238_v63 }
0x1619   :  { %3070 = vtanh.f32 %v3609_v0  ;;  %v1278_v16 = vrot.slane %v3609_v0, 7 }
0x161a   :  { %v1252_v1 = vpop.permute.xlu0 %1251 }
0x161b   :  { %v3613_v3 = vadd.f32 %v1252_v1, %v1237_v57 }
0x161d   :  { %3072 = vtanh.f32 %v3613_v3  ;;  %v1279_v22 = vsel %vm191_vm0, %v1278_v16, %v3613_v3 }
0x1623   :  { %v3071_v11 = vpop.eup %3070 }
0x1624   :  { %1265 = vrot.lane.b32.xlu0 %v3071_v11, %s3216_s11 }
0x1627   :  { %v3073_v14 = vpop.eup %3072 }
0x1628   :  { %1263 = vrot.lane.b32.xlu0 %v3073_v14, %s3216_s11 }
0x162c   :  { %1280 = vrot.lane.b32.xlu0 %v1279_v22, %s3218_s27 }
0x1696   :  { %v1266_v23 = vpop.permute.xlu0 %1265 }
0x1697   :  { %v1270_v27 = vmul.f32 %v3067_v33, %v1266_v23 }
0x1699   :  { %v1285_v29 = vrot.slane %v1270_v27, 7 }
0x169a   :  { %v1264_v28 = vpop.permute.xlu0 %1263 }
0x169b   :  { %v1269_v30 = vmul.f32 %v3069_v59, %v1264_v28 }
0x169d   :  { %v3647_v31 = vsel %vm191_vm0, %v1285_v29, %v1269_v30 }
0x169e   :  { %1287 = vrot.lane.b32.xlu1 %v3647_v31, %s3216_s11  ;;  %v1281_v32 = vpop.permute.xlu0 %1280 }
0x1710   :  { %v1288_v34 = vpop.permute.xlu1 %1287 }
0x1711   :  { %v1290_v35 = vsel %vm356_vm2, %v1281_v32, %v1288_v34  ;;  %v3685_v32 = vld [vmem:[%s4013_s2 + $0x8] sm:$0xff] }
0x1712   :  { %v1291_v36 = vpack.c.bf16 %v1290_v35, %v1290_v35 }
0x1714   :  { %2757 = vmatmul.mubr.msk.bf16.vlgmr.msra.gmra.mrb[8].mxu0 %vm85_vm3, %v1291_v36 }
0x1715   :  { %1998 = vmatprep.mubr.bf16.mxu0 %v3213_v2 }
0x17e7   :  { %v1378_v37 = vpop.f32.mrb[8].mxu0 }
0x17e8   :  { %v1392_v39 = vrot.slane %v1378_v37, %v3297_v15  ;;  %v3655_v40 = vpop.f32.mrb[9].mxu0 }
0x17e9   :  { %v1382_v19 = vpop.f32.mrb[10].mxu0 }
0x17ea   :  { %v1393_v41 = vcombine.high %v1392_v39, %v1392_v39  ;;  %v1400_v42 = vrot.slane %v1392_v39, %v3297_v15  ;;  %v1383_v43 = vpop.f32.mrb[11].mxu0  ;;  %v3691_v39 = vld [vmem:[%s4013_s2] sm:$0xff] }
0x17ec   :  { %v1407_v45 = vrot.slane %v1393_v41, %v3297_v15  ;;  %v1411_v46 = vrot.slane %v1400_v42, %v3300_v18 }
0x17ee   :  { %v1415_v47 = vrot.slane %v1407_v45, %v3300_v18  ;;  %v1418_v7 = vadd.f32 %v2738_v20, %v1411_v46 }
0x17f0   :  { %v1419_v48 = vadd.f32 %v2739_v4, %v1415_v47  ;;  %3074 = vtanh.f32 %v1418_v7  ;;  %v1527_v4 = vrot.slane %v3655_v40, 1 }
0x17f2   :  { %3076 = vtanh.f32 %v1419_v48 }
0x17fa   :  { %v3075_v26 = vpop.eup %3074 }
0x17fb   :  { %v1428_v51 = vmul.f32 %v3075_v26, %v2758_v50  ;;  %v3698_v26 = vld [vmem:[%s4015_s4] ss:$0 sm:$0xff] }
0x17fc   :  { %v3077_v53 = vpop.eup %3076 }
0x17fd   :  { %1430 = vadd.xlane.f32.xlu0 %v1428_v51  ;;  %v1429_v55 = vmul.f32 %v3077_v53, %v2758_v50 }
0x17ff   :  { %1432 = vadd.xlane.f32.xlu1 %v1429_v55 }
0x188a   :  { %v1431_v56 = vpop.xlane.xlu0 %1430 }
0x188b   :  { %v1439_v33 = vrot.slane %v1431_v56, %v3317_v38 }
0x188c   :  { %v1433_v58 = vpop.xlane.xlu1 %1432 }
0x188d   :  { %v1443_v49 = vrot.slane %v1433_v58, %v3317_v38 }
0x188f   :  { %v1444_v25 = vsel %vm191_vm0, %v1443_v49, %v1439_v33 }
0x1890   :  { %v1446_v59 = vsel %vm194_vm1, %v1444_v25, -inf }
0x1891   :  { %1447 = vmax.xlane.f32.xlu0 %v1446_v59 }
0x191e   :  { %v1448_v60 = vpop.xlane.xlu0 %1447 }
0x191f   :  { %v1453_v61 = vrot.slane %v1448_v60, %v3300_v18  ;;  %v1457_v63 = vrot.slane %v1448_v60, %v3323_v44 }
0x1921   :  { %v1460_v54 = vsub.f32 %v1431_v56, %v1453_v61  ;;  %v1461_v57 = vsub.f32 %v1433_v58, %v1457_v63 }
0x1923   :  { %v1462_v1 = vmul.f32 1.442695, %v1460_v54  ;;  %v1464_v5 = vmul.f32 1.442695, %v1461_v57 }
0x1925   :  { %3078 = vpow2.f32 %v1462_v1 }
0x1926   :  { %3080 = vpow2.f32 %v1464_v5 }
0x192f   :  { %v3079_v52 = vpop.eup %3078 }
0x1930   :  { %v3081_v6 = vpop.eup %3080  ;;  %1469 = vperm.xlu0 %2865, %v3079_v52  }
0x1931   :  { %1472 = vperm.xlu1 %2864, %v3081_v6  }
0x19af   :  { %v1470_v62 = vpop.permute.xlu0 %1469 }
0x19b0   :  { %v1473_v8 = vpop.permute.xlu1 %1472  ;;  %v1477_v11 = vrot.slane %v1470_v62, %v3317_v38 }
0x19b1   :  { %v1481_v12 = vrot.slane %v1473_v8, %v3317_v38 }
0x19b3   :  { %v1482_v13 = vsel %vm191_vm0, %v1481_v12, %v1477_v11 }
0x19b4   :  { %v1484_v14 = vsel %vm194_vm1, %v1482_v13, 0.0 }
0x19b5   :  { %1485 = vadd.xlane.f32.xlu0 %v1484_v14  ;;  %v2926_v14 = vld [vmem:[%s4014_s3 + $0x140] ss:$8 sps:$4 sm:$0xff]  }
0x1a42   :  { %v1486_v16 = vpop.xlane.xlu0 %1485 }
0x1a43   :  { %v1495_v21 = vrot.slane %v1486_v16, %v3323_v44  ;;  %v1491_v22 = vrot.slane %v1486_v16, %v3300_v18  ;;  %v2931_v16 = vld [vmem:[%s4014_s3 + $0x154] ss:$8 sps:$4 sm:$0xff]  }
0x1a45   :  { %3082 = vrcp.f32 %v1495_v21  ;;  %v2934_v21 = vld [vmem:[%s4014_s3 + $0x164] ss:$8 sps:$4 sm:$0xff]  }
0x1a46   :  { %3084 = vrcp.f32 %v1491_v22 }
0x1a4f   :  { %v3083_v23 = vpop.eup %3082 }
0x1a50   :  { %v1501_v27 = vmul.f32 %v3083_v23, %v3081_v6  ;;  %v3085_v28 = vpop.eup %3084  ;;  %v2932_v23 = vld [vmem:[%s4014_s3 + $0x160] ss:$8 sps:$4 sm:$0xff]  }
0x1a51   :  { %v1499_v29 = vmul.f32 %v3085_v28, %v3079_v52 }
0x1a52   :  { %1509 = vperm.xlu1 %2864, %v1501_v27   ;;  %v2937_v27 = vld [vmem:[%s4014_s3 + $0x174] ss:$8 sps:$4 sm:$0xff]  }
0x1a56   :  { %1504 = vperm.xlu1 %2864, %v1499_v29  }
0x1ad1   :  { %v1510_v30 = vpop.permute.xlu1 %1509 }
0x1ad2   :  { %v1513_v34 = vmul.f32 %v3685_v32, %v1510_v30  ;;  %v2935_v30 = vld [vmem:[%s4014_s3 + $0x170] ss:$8 sps:$4 sm:$0xff]  }
0x1ad4   :  { %v1520_v35 = vrot.slane %v1513_v34, 4 }
0x1ad5   :  { %v1505_v36 = vpop.permute.xlu1 %1504 }
0x1ad6   :  { %v1521_v37 = vadd.f32 %v1520_v35, %v1513_v34  ;;  %v1512_v19 = vmul.f32 %v3691_v39, %v1505_v36 }
0x1ad8   :  { %v1522_v41 = vrot.slane %v1521_v37, 2  ;;  %v1514_v42 = vrot.slane %v1512_v19, 4 }
0x1ada   :  { %v1523_v43 = vadd.f32 %v1522_v41, %v1521_v37  ;;  %v1515_v20 = vadd.f32 %v1514_v42, %v1512_v19 }
0x1adc   :  { %v1524_v45 = vrot.slane %v1523_v43, 1  ;;  %v1516_v46 = vrot.slane %v1515_v20, 2 }
0x1ade   :  { %v1525_v47 = vadd.f32 %v1524_v45, %v1523_v43  ;;  %v1517_v7 = vadd.f32 %v1516_v46, %v1515_v20 }
0x1ae0   :  { %v1531_v48 = vadd.f32 %v1527_v4, %v1525_v47  ;;  %v1518_v50 = vrot.slane %v1517_v7, 1 }
0x1ae2   :  { %v1533_v51 = vadd.f32 %v3698_v26, %v1531_v48  ;;  %v1519_v53 = vadd.f32 %v1518_v50, %v1517_v7 }
0x1ae4   :  { %3086 = vtanh.f32 %v1533_v51  ;;  %v1530_v55 = vadd.f32 %v1519_v53, %v3655_v40  ;;  %v2760_v49 = vmul.f32 -1.442695, %v1533_v51 }
0x1ae6   :  { %v1532_v56 = vadd.f32 %v3698_v26, %v1530_v55  ;;  %v2761_v55 = vld [vmem:[%s4011_s0 + $0x50] sm:$0xff] }
0x1ae8   :  { %3088 = vtanh.f32 %v1532_v56  ;;  %v2759_v25 = vmul.f32 -1.442695, %v1532_v56 }
0x1ae9   :  { %3090 = vpow2.f32 %v2760_v49 }
0x1aea   :  { %3092 = vpow2.f32 %v2759_v25 }
0x1aee   :  { %v3087_v58 = vpop.eup %3086 }
0x1aef   :  { %1554 = vrot.lane.b32.xlu1 %v3087_v58, %s3216_s11 }
0x1af2   :  { %v3089_v33 = vpop.eup %3088 }
0x1af3   :  { %1552 = vrot.lane.b32.xlu1 %v3089_v33, %s3216_s11  ;;  %v3091_v59 = vpop.eup %3090 }
0x1af4   :  { %v1541_v60 = vadd.f32 1.0, %v3091_v59  ;;  %v3093_v61 = vpop.eup %3092  ;;  %v2781_v59 = vld [vmem:[%s4012_s1 + $0x5] ss:$0 sm:$0xff] }
0x1af5   :  { %v1540_v63 = vadd.f32 1.0, %v3093_v61 }
0x1af6   :  { %3094 = vrcp.f32 %v1541_v60 }
0x1af7   :  { %3096 = vrcp.f32 %v1540_v63 }
0x1b00   :  { %v3095_v40 = vpop.eup %3094 }
0x1b01   :  { %v3097_v1 = vpop.eup %3096  ;;  %v1549_v6 = vmul.f32 %v3095_v40, %v3609_v0  ;;  %v2928_v0 = vld [vmem:[%s4014_s3 + $0x144] ss:$8 sps:$4 sm:$0xff]  }
0x1b02   :  { %v1548_v11 = vmul.f32 %v3097_v1, %v3613_v3  ;;  %1655 = vmatprep.subr.bf16.mxu1 %v2928_v0  ;;  %v2929_v3 = vld [vmem:[%s4014_s3 + $0x150] ss:$8 sps:$4 sm:$0xff]  }
0x1b03   :  { %1656 = vmatpush1.bf16.msra.mxu1 %v2926_v14 }
0x1b04   :  { %1657 = vmatprep.subr.bf16.mxu1 %v2931_v16 }
0x1b07   :  { %1658 = vmatpush1.bf16.msra.mxu1 %v2929_v3 }
0x1b08   :  { %1659 = vmatprep.subr.bf16.mxu1 %v2934_v21 }
0x1b0b   :  { %1660 = vmatpush1.bf16.msra.mxu1 %v2932_v23 }
0x1b0c   :  { %1661 = vmatprep.subr.bf16.mxu1 %v2937_v27 }
0x1b0f   :  { %1662 = vmatpush1.bf16.msra.mxu1 %v2935_v30 }
0x1b61   :  { %v1555_v54 = vpop.permute.xlu1 %1554 }
0x1b62   :  { %v1559_v57 = vmul.f32 %v3095_v40, %v1555_v54 }
0x1b64   :  { %1564 = vrot.lane.b32.xlu1 %v1559_v57, %s3217_s12 }
0x1b65   :  { %v1553_v5 = vpop.permute.xlu1 %1552 }
0x1b66   :  { %v1558_v52 = vmul.f32 %v3097_v1, %v1553_v5 }
0x1b68   :  { %1562 = vrot.lane.b32.xlu0 %v1558_v52, %s3217_s12 }
0x1bd6   :  { %v1565_v62 = vpop.permute.xlu1 %1564 }
0x1bd7   :  { %v3708_v8 = vadd.f32 %v1565_v62, %v1549_v6 }
0x1bd9   :  { %3098 = vtanh.f32 %v3708_v8  ;;  %v1589_v29 = vrot.slane %v3708_v8, 7 }
0x1bda   :  { %v1563_v12 = vpop.permute.xlu0 %1562 }
0x1bdb   :  { %v3712_v13 = vadd.f32 %v1563_v12, %v1548_v11 }
0x1bdd   :  { %3100 = vtanh.f32 %v3712_v13  ;;  %v1590_v34 = vsel %vm191_vm0, %v1589_v29, %v3712_v13 }
0x1be3   :  { %v3099_v22 = vpop.eup %3098 }
0x1be4   :  { %1576 = vrot.lane.b32.xlu1 %v3099_v22, %s3216_s11 }
0x1be7   :  { %v3101_v28 = vpop.eup %3100 }
0x1be8   :  { %1574 = vrot.lane.b32.xlu1 %v3101_v28, %s3216_s11 }
0x1bec   :  { %1591 = vrot.lane.b32.xlu1 %v1590_v34, %s3218_s27 }
0x1c56   :  { %v1577_v35 = vpop.permute.xlu1 %1576 }
0x1c57   :  { %v1581_v36 = vmul.f32 %v3095_v40, %v1577_v35 }
0x1c59   :  { %v1596_v19 = vrot.slane %v1581_v36, 7 }
0x1c5a   :  { %v1575_v37 = vpop.permute.xlu1 %1574 }
0x1c5b   :  { %v1580_v41 = vmul.f32 %v3097_v1, %v1575_v37 }
0x1c5d   :  { %v3746_v42 = vsel %vm191_vm0, %v1596_v19, %v1580_v41 }
0x1c5e   :  { %1598 = vrot.lane.b32.xlu1 %v3746_v42, %s3216_s11  ;;  %v1592_v43 = vpop.permute.xlu1 %1591 }
0x1cd0   :  { %v1599_v20 = vpop.permute.xlu1 %1598 }
0x1cd1   :  { %v1601_v45 = vsel %vm356_vm2, %v1592_v43, %v1599_v20 }
0x1cd2   :  { %v1602_v46 = vpack.c.bf16 %v1601_v45, %v1601_v45 }
0x1cd4   :  { %2780 = vmatmul.mubr.msk.bf16.vlgmr.msra.gmra.mrb[8].mxu1 %vm85_vm3, %v1602_v46 }
0x1cd5   :  { %2309 = vmatprep.mubr.bf16.mxu1 %v3213_v2  ;;  %v2762_v2 = vld [vmem:[%s4011_s0 + $0x58] sm:$0xff] }
0x1da7   :  { %v1689_v4 = vpop.f32.mrb[8].mxu1 }
0x1da8   :  { %v1703_v47 = vrot.slane %v1689_v4, %v3297_v15  ;;  %v3754_v7 = vpop.f32.mrb[9].mxu1 }
0x1da9   :  { %v1693_v48 = vpop.f32.mrb[10].mxu1 }
0x1daa   :  { %v1704_v50 = vcombine.high %v1703_v47, %v1703_v47  ;;  %v1711_v51 = vrot.slane %v1703_v47, %v3297_v15  ;;  %v1694_v53 = vpop.f32.mrb[11].mxu1 }
0x1dac   :  { %v1718_v56 = vrot.slane %v1704_v50, %v3297_v15  ;;  %v1722_v58 = vrot.slane %v1711_v51, %v3300_v18 }
0x1dae   :  { %v1726_v33 = vrot.slane %v1718_v56, %v3300_v18  ;;  %v1729_v49 = vadd.f32 %v2761_v55, %v1722_v58 }
0x1db0   :  { %v1730_v25 = vadd.f32 %v2762_v2, %v1726_v33  ;;  %3102 = vtanh.f32 %v1729_v49  ;;  %v1838_v33 = vrot.slane %v3754_v7, 1 }
0x1db2   :  { %3104 = vtanh.f32 %v1730_v25 }
0x1dba   :  { %v3103_v60 = vpop.eup %3102 }
0x1dbb   :  { %v1739_v61 = vmul.f32 %v3103_v60, %v2781_v59 }
0x1dbc   :  { %v3105_v63 = vpop.eup %3104 }
0x1dbd   :  { %1741 = vadd.xlane.f32.xlu1 %v1739_v61  ;;  %v1740_v40 = vmul.f32 %v3105_v63, %v2781_v59 }
0x1dbf   :  { %1743 = vadd.xlane.f32.xlu0 %v1740_v40 }
0x1e4a   :  { %v1742_v54 = vpop.xlane.xlu1 %1741 }
0x1e4b   :  { %v1750_v1 = vrot.slane %v1742_v54, %v3317_v38 }
0x1e4c   :  { %v1744_v57 = vpop.xlane.xlu0 %1743 }
0x1e4d   :  { %v1754_v5 = vrot.slane %v1744_v57, %v3317_v38 }
0x1e4f   :  { %v1755_v52 = vsel %vm191_vm0, %v1754_v5, %v1750_v1 }
0x1e50   :  { %v1757_v6 = vsel %vm194_vm1, %v1755_v52, -inf }
0x1e51   :  { %1758 = vmax.xlane.f32.xlu1 %v1757_v6 }
0x1ede   :  { %v1759_v62 = vpop.xlane.xlu1 %1758 }
0x1edf   :  { %v1764_v11 = vrot.slane %v1759_v62, %v3300_v18  ;;  %v1768_v12 = vrot.slane %v1759_v62, %v3323_v44 }
0x1ee1   :  { %v1771_v14 = vsub.f32 %v1742_v54, %v1764_v11  ;;  %v1772_v0 = vsub.f32 %v1744_v57, %v1768_v12 }
0x1ee3   :  { %v1773_v16 = vmul.f32 1.442695, %v1771_v14  ;;  %v1775_v3 = vmul.f32 1.442695, %v1772_v0 }
0x1ee5   :  { %3106 = vpow2.f32 %v1773_v16 }
0x1ee6   :  { %3108 = vpow2.f32 %v1775_v3 }
0x1eef   :  { %v3107_v21 = vpop.eup %3106 }
0x1ef0   :  { %v3109_v22 = vpop.eup %3108  ;;  %1780 = vperm.xlu0 %2865, %v3107_v21  }
0x1ef1   :  { %1783 = vperm.xlu1 %2864, %v3109_v22  }
0x1f6f   :  { %v1781_v23 = vpop.permute.xlu0 %1780 }
0x1f70   :  { %v1784_v27 = vpop.permute.xlu1 %1783  ;;  %v1788_v28 = vrot.slane %v1781_v23, %v3317_v38 }
0x1f71   :  { %v1792_v29 = vrot.slane %v1784_v27, %v3317_v38 }
0x1f73   :  { %v1793_v30 = vsel %vm191_vm0, %v1792_v29, %v1788_v28 }
0x1f74   :  { %v1795_v34 = vsel %vm194_vm1, %v1793_v30, 0.0 }
0x1f75   :  { %1796 = vadd.xlane.f32.xlu1 %v1795_v34  ;;  %v2938_v34 = vld [vmem:[%s4014_s3 + $0x180] ss:$8 sps:$4 sm:$0xff]  }
0x2002   :  { %v1797_v35 = vpop.xlane.xlu1 %1796 }
0x2003   :  { %v1806_v36 = vrot.slane %v1797_v35, %v3323_v44  ;;  %v1802_v37 = vrot.slane %v1797_v35, %v3300_v18  ;;  %v2943_v35 = vld [vmem:[%s4014_s3 + $0x194] ss:$8 sps:$4 sm:$0xff]  }
0x2005   :  { %3110 = vrcp.f32 %v1806_v36  ;;  %v2946_v36 = vld [vmem:[%s4014_s3 + $0x1a4] ss:$8 sps:$4 sm:$0xff]  }
0x2006   :  { %3112 = vrcp.f32 %v1802_v37 }
0x200f   :  { %v3111_v19 = vpop.eup %3110 }
0x2010   :  { %v1812_v41 = vmul.f32 %v3111_v19, %v3109_v22  ;;  %v3113_v43 = vpop.eup %3112  ;;  %v2944_v19 = vld [vmem:[%s4014_s3 + $0x1a0] ss:$8 sps:$4 sm:$0xff]  }
0x2011   :  { %v1810_v20 = vmul.f32 %v3113_v43, %v3107_v21 }
0x2012   :  { %1820 = vperm.xlu0 %2865, %v1812_v41   ;;  %v2949_v41 = vld [vmem:[%s4014_s3 + $0x1b4] ss:$8 sps:$4 sm:$0xff]  }
0x2016   :  { %1815 = vperm.xlu0 %2865, %v1810_v20  }
0x2091   :  { %v1821_v45 = vpop.permute.xlu0 %1820 }
0x2092   :  { %v1824_v46 = vmul.f32 %v3685_v32, %v1821_v45  ;;  %v2947_v45 = vld [vmem:[%s4014_s3 + $0x1b0] ss:$8 sps:$4 sm:$0xff]  }
0x2094   :  { %v1831_v4 = vrot.slane %v1824_v46, 4 }
0x2095   :  { %v1816_v47 = vpop.permute.xlu0 %1815 }
0x2096   :  { %v1832_v48 = vadd.f32 %v1831_v4, %v1824_v46  ;;  %v1823_v50 = vmul.f32 %v3691_v39, %v1816_v47 }
0x2098   :  { %v1833_v51 = vrot.slane %v1832_v48, 2  ;;  %v1825_v53 = vrot.slane %v1823_v50, 4 }
0x209a   :  { %v1834_v55 = vadd.f32 %v1833_v51, %v1832_v48  ;;  %v1826_v56 = vadd.f32 %v1825_v53, %v1823_v50 }
0x209c   :  { %v1835_v58 = vrot.slane %v1834_v55, 1  ;;  %v1827_v2 = vrot.slane %v1826_v56, 2 }
0x209e   :  { %v1836_v49 = vadd.f32 %v1835_v58, %v1834_v55  ;;  %v1828_v25 = vadd.f32 %v1827_v2, %v1826_v56 }
0x20a0   :  { %v1842_v59 = vadd.f32 %v1838_v33, %v1836_v49  ;;  %v1829_v60 = vrot.slane %v1828_v25, 1 }
0x20a2   :  { %v1844_v61 = vadd.f32 %v3698_v26, %v1842_v59  ;;  %v1830_v63 = vadd.f32 %v1829_v60, %v1828_v25 }
0x20a4   :  { %3114 = vtanh.f32 %v1844_v61  ;;  %v1841_v40 = vadd.f32 %v1830_v63, %v3754_v7  ;;  %v2783_v5 = vmul.f32 -1.442695, %v1844_v61 }
0x20a6   :  { %v1843_v54 = vadd.f32 %v3698_v26, %v1841_v40  ;;  %v2784_v40 = vld [vmem:[%s4011_s0 + $0x60] sm:$0xff] }
0x20a8   :  { %3116 = vtanh.f32 %v1843_v54  ;;  %v2782_v52 = vmul.f32 -1.442695, %v1843_v54 }
0x20a9   :  { %3118 = vpow2.f32 %v2783_v5 }
0x20aa   :  { %3120 = vpow2.f32 %v2782_v52 }
0x20ae   :  { %v3115_v57 = vpop.eup %3114 }
0x20af   :  { %1865 = vrot.lane.b32.xlu0 %v3115_v57, %s3216_s11 }
0x20b2   :  { %v3117_v1 = vpop.eup %3116 }
0x20b3   :  { %1863 = vrot.lane.b32.xlu0 %v3117_v1, %s3216_s11  ;;  %v3119_v6 = vpop.eup %3118  ;;  %v2785_v1 = vld [vmem:[%s4011_s0 + $0x68] sm:$0xff] }
0x20b4   :  { %v1852_v62 = vadd.f32 1.0, %v3119_v6  ;;  %v3121_v11 = vpop.eup %3120 }
0x20b5   :  { %v1851_v12 = vadd.f32 1.0, %v3121_v11 }
0x20b6   :  { %3122 = vrcp.f32 %v1852_v62  ;;  %v2804_v62 = vld [vmem:[%s4012_s1 + $0x6] ss:$0 sm:$0xff] }
0x20b7   :  { %3124 = vrcp.f32 %v1851_v12 }
0x20c0   :  { %v3123_v7 = vpop.eup %3122 }
0x20c1   :  { %v3125_v16 = vpop.eup %3124  ;;  %v1860_v22 = vmul.f32 %v3123_v7, %v3708_v8  ;;  %v2940_v8 = vld [vmem:[%s4014_s3 + $0x184] ss:$8 sps:$4 sm:$0xff]  }
0x20c2   :  { %v1859_v28 = vmul.f32 %v3125_v16, %v3712_v13  ;;  %1966 = vmatprep.subr.bf16.mxu0 %v2940_v8  ;;  %v2941_v13 = vld [vmem:[%s4014_s3 + $0x190] ss:$8 sps:$4 sm:$0xff]  }
0x20c3   :  { %1967 = vmatpush1.bf16.msra.mxu0 %v2938_v34 }
0x20c4   :  { %1968 = vmatprep.subr.bf16.mxu0 %v2943_v35 }
0x20c7   :  { %1969 = vmatpush1.bf16.msra.mxu0 %v2941_v13 }
0x20c8   :  { %1970 = vmatprep.subr.bf16.mxu0 %v2946_v36 }
0x20cb   :  { %1971 = vmatpush1.bf16.msra.mxu0 %v2944_v19 }
0x20cc   :  { %1972 = vmatprep.subr.bf16.mxu0 %v2949_v41 }
0x20cf   :  { %1973 = vmatpush1.bf16.msra.mxu0 %v2947_v45 }
0x20d0   :  { %2849 = vmatprep.subr.bf16.mxu0 %v3214_v9 }
0x2121   :  { %v1866_v14 = vpop.permute.xlu0 %1865 }
0x2122   :  { %v1870_v0 = vmul.f32 %v3123_v7, %v1866_v14 }
0x2124   :  { %1875 = vrot.lane.b32.xlu0 %v1870_v0, %s3217_s12 }
0x2125   :  { %v1864_v3 = vpop.permute.xlu0 %1863 }
0x2126   :  { %v1869_v21 = vmul.f32 %v3125_v16, %v1864_v3 }
0x2128   :  { %1873 = vrot.lane.b32.xlu0 %v1869_v21, %s3217_s12 }
0x2196   :  { %v1876_v23 = vpop.permute.xlu0 %1875 }
0x2197   :  { %v3792_v27 = vadd.f32 %v1876_v23, %v1860_v22 }
0x2199   :  { %3126 = vtanh.f32 %v3792_v27  ;;  %v1900_v20 = vrot.slane %v3792_v27, 7 }
0x219a   :  { %v1874_v29 = vpop.permute.xlu0 %1873 }
0x219b   :  { %v3796_v30 = vadd.f32 %v1874_v29, %v1859_v28 }
0x219d   :  { %3128 = vtanh.f32 %v3796_v30  ;;  %v1901_v46 = vsel %vm191_vm0, %v1900_v20, %v3796_v30 }
0x21a3   :  { %v3127_v37 = vpop.eup %3126 }
0x21a4   :  { %1887 = vrot.lane.b32.xlu0 %v3127_v37, %s3216_s11 }
0x21a7   :  { %v3129_v43 = vpop.eup %3128 }
0x21a8   :  { %1885 = vrot.lane.b32.xlu0 %v3129_v43, %s3216_s11 }
0x21ac   :  { %1902 = vrot.lane.b32.xlu0 %v1901_v46, %s3218_s27 }
0x2216   :  { %v1888_v4 = vpop.permute.xlu0 %1887 }
0x2217   :  { %v1892_v47 = vmul.f32 %v3123_v7, %v1888_v4 }
0x2219   :  { %v1907_v50 = vrot.slane %v1892_v47, 7 }
0x221a   :  { %v1886_v48 = vpop.permute.xlu0 %1885 }
0x221b   :  { %v1891_v51 = vmul.f32 %v3125_v16, %v1886_v48 }
0x221d   :  { %v1908_v53 = vsel %vm191_vm0, %v1907_v50, %v1891_v51 }
0x221e   :  { %1909 = vrot.lane.b32.xlu1 %v1908_v53, %s3216_s11  ;;  %v1903_v55 = vpop.permute.xlu0 %1902 }
0x2290   :  { %v3832_v56 = vpop.permute.xlu1 %1909 }
0x2291   :  { %v1912_v58 = vsel %vm356_vm2, %v1903_v55, %v3832_v56 }
0x2292   :  { %v1913_v2 = vpack.c.bf16 %v1912_v58, %v1912_v58 }
0x2294   :  { %2803 = vmatmul.mubr.msk.bf16.vlgmr.msra.gmra.mrb[12].mxu0 %vm85_vm3, %v1913_v2 }
0x2367   :  { %v2000_v33 = vpop.f32.mrb[12].mxu0 }
0x2368   :  { %v2014_v49 = vrot.slane %v2000_v33, %v3297_v15  ;;  %v3838_v25 = vpop.f32.mrb[13].mxu0 }
0x2369   :  { %v2004_v59 = vpop.f32.mrb[14].mxu0 }
0x236a   :  { %v2015_v60 = vcombine.high %v2014_v49, %v2014_v49  ;;  %v2022_v61 = vrot.slane %v2014_v49, %v3297_v15  ;;  %v2005_v63 = vpop.f32.mrb[15].mxu0 }
0x236c   :  { %v2029_v54 = vrot.slane %v2015_v60, %v3297_v15  ;;  %v2033_v57 = vrot.slane %v2022_v61, %v3300_v18 }
0x236e   :  { %v2037_v5 = vrot.slane %v2029_v54, %v3300_v18  ;;  %v2040_v52 = vadd.f32 %v2784_v40, %v2033_v57 }
0x2370   :  { %v2041_v6 = vadd.f32 %v2785_v1, %v2037_v5  ;;  %3130 = vtanh.f32 %v2040_v52  ;;  %v2149_v52 = vrot.slane %v3838_v25, 1 }
0x2372   :  { %3132 = vtanh.f32 %v2041_v6 }
0x237a   :  { %v3131_v11 = vpop.eup %3130 }
0x237b   :  { %v2050_v12 = vmul.f32 %v3131_v11, %v2804_v62 }
0x237c   :  { %v3133_v7 = vpop.eup %3132 }
0x237d   :  { %2052 = vadd.xlane.f32.xlu0 %v2050_v12  ;;  %v2051_v14 = vmul.f32 %v3133_v7, %v2804_v62 }
0x237f   :  { %2054 = vadd.xlane.f32.xlu1 %v2051_v14 }
0x240a   :  { %v2053_v0 = vpop.xlane.xlu0 %2052 }
0x240b   :  { %v2061_v3 = vrot.slane %v2053_v0, %v3317_v38 }
0x240c   :  { %v2055_v16 = vpop.xlane.xlu1 %2054 }
0x240d   :  { %v2065_v21 = vrot.slane %v2055_v16, %v3317_v38 }
0x240f   :  { %v2066_v22 = vsel %vm191_vm0, %v2065_v21, %v2061_v3 }
0x2410   :  { %v2068_v23 = vsel %vm194_vm1, %v2066_v22, -inf }
0x2411   :  { %2069 = vmax.xlane.f32.xlu0 %v2068_v23 }
0x249e   :  { %v2070_v28 = vpop.xlane.xlu0 %2069 }
0x249f   :  { %v2075_v29 = vrot.slane %v2070_v28, %v3300_v18  ;;  %v2079_v34 = vrot.slane %v2070_v28, %v3323_v44 }
0x24a1   :  { %v2082_v8 = vsub.f32 %v2053_v0, %v2075_v29  ;;  %v2083_v35 = vsub.f32 %v2055_v16, %v2079_v34 }
0x24a3   :  { %v2084_v13 = vmul.f32 1.442695, %v2082_v8  ;;  %v2086_v36 = vmul.f32 1.442695, %v2083_v35 }
0x24a5   :  { %3134 = vpow2.f32 %v2084_v13 }
0x24a6   :  { %3136 = vpow2.f32 %v2086_v36 }
0x24af   :  { %v3135_v37 = vpop.eup %3134 }
0x24b0   :  { %v3137_v19 = vpop.eup %3136  ;;  %2091 = vperm.xlu0 %2865, %v3135_v37  }
0x24b1   :  { %2094 = vperm.xlu1 %2864, %v3137_v19  }
0x252f   :  { %v2092_v41 = vpop.permute.xlu0 %2091 }
0x2530   :  { %v2095_v43 = vpop.permute.xlu1 %2094  ;;  %v2099_v20 = vrot.slane %v2092_v41, %v3317_v38 }
0x2531   :  { %v2103_v45 = vrot.slane %v2095_v43, %v3317_v38 }
0x2533   :  { %v2104_v46 = vsel %vm191_vm0, %v2103_v45, %v2099_v20 }
0x2534   :  { %v2106_v4 = vsel %vm194_vm1, %v2104_v46, 0.0 }
0x2535   :  { %2107 = vadd.xlane.f32.xlu0 %v2106_v4 }
0x25c2   :  { %v2108_v47 = vpop.xlane.xlu0 %2107 }
0x25c3   :  { %v2117_v48 = vrot.slane %v2108_v47, %v3323_v44  ;;  %v2113_v50 = vrot.slane %v2108_v47, %v3300_v18  ;;  %v2950_v47 = vld [vmem:[%s4014_s3 + $0x1c0] ss:$8 sps:$4 sm:$0xff]  }
0x25c5   :  { %3138 = vrcp.f32 %v2117_v48  ;;  %v2955_v48 = vld [vmem:[%s4014_s3 + $0x1d4] ss:$8 sps:$4 sm:$0xff]  }
0x25c6   :  { %3140 = vrcp.f32 %v2113_v50  ;;  %v2958_v50 = vld [vmem:[%s4014_s3 + $0x1e4] ss:$8 sps:$4 sm:$0xff]  }
0x25cf   :  { %v3139_v51 = vpop.eup %3138 }
0x25d0   :  { %v2123_v53 = vmul.f32 %v3139_v51, %v3137_v19  ;;  %v3141_v55 = vpop.eup %3140 }
0x25d1   :  { %v2121_v58 = vmul.f32 %v3141_v55, %v3135_v37  ;;  %v2961_v55 = vld [vmem:[%s4014_s3 + $0x1f4] ss:$8 sps:$4 sm:$0xff]  }
0x25d2   :  { %2131 = vperm.xlu1 %2864, %v2123_v53   ;;  %v2956_v53 = vld [vmem:[%s4014_s3 + $0x1e0] ss:$8 sps:$4 sm:$0xff]  }
0x25d6   :  { %2126 = vperm.xlu1 %2864, %v2121_v58  }
0x2651   :  { %v2132_v2 = vpop.permute.xlu1 %2131 }
0x2652   :  { %v2135_v33 = vmul.f32 %v3685_v32, %v2132_v2 }
0x2654   :  { %v2142_v49 = vrot.slane %v2135_v33, 4 }
0x2655   :  { %v2127_v59 = vpop.permute.xlu1 %2126 }
0x2656   :  { %v2143_v60 = vadd.f32 %v2142_v49, %v2135_v33  ;;  %v2134_v61 = vmul.f32 %v3691_v39, %v2127_v59  ;;  %v2959_v33 = vld [vmem:[%s4014_s3 + $0x1f0] ss:$8 sps:$4 sm:$0xff]  }
0x2658   :  { %v2144_v63 = vrot.slane %v2143_v60, 2  ;;  %v2136_v40 = vrot.slane %v2134_v61, 4 }
0x265a   :  { %v2145_v54 = vadd.f32 %v2144_v63, %v2143_v60  ;;  %v2137_v57 = vadd.f32 %v2136_v40, %v2134_v61 }
0x265c   :  { %v2146_v1 = vrot.slane %v2145_v54, 1  ;;  %v2138_v5 = vrot.slane %v2137_v57, 2 }
0x265e   :  { %v2147_v6 = vadd.f32 %v2146_v1, %v2145_v54  ;;  %v2139_v62 = vadd.f32 %v2138_v5, %v2137_v57 }
0x2660   :  { %v2153_v11 = vadd.f32 %v2149_v52, %v2147_v6  ;;  %v2140_v12 = vrot.slane %v2139_v62, 1 }
0x2662   :  { %v2155_v7 = vadd.f32 %v3698_v26, %v2153_v11  ;;  %v2141_v14 = vadd.f32 %v2140_v12, %v2139_v62 }
0x2664   :  { %3142 = vtanh.f32 %v2155_v7  ;;  %v2152_v0 = vadd.f32 %v2141_v14, %v3838_v25  ;;  %v2806_v22 = vmul.f32 -1.442695, %v2155_v7 }
0x2666   :  { %v2154_v16 = vadd.f32 %v3698_v26, %v2152_v0 }
0x2668   :  { %3144 = vtanh.f32 %v2154_v16  ;;  %v2805_v23 = vmul.f32 -1.442695, %v2154_v16  ;;  %v2807_v16 = vld [vmem:[%s4011_s0 + $0x70] sm:$0xff] }
0x2669   :  { %3146 = vpow2.f32 %v2806_v22  ;;  %v2808_v22 = vld [vmem:[%s4011_s0 + $0x78] sm:$0xff] }
0x266a   :  { %3148 = vpow2.f32 %v2805_v23 }
0x266e   :  { %v3143_v3 = vpop.eup %3142 }
0x266f   :  { %2176 = vrot.lane.b32.xlu1 %v3143_v3, %s3216_s11 }
0x2672   :  { %v3145_v21 = vpop.eup %3144 }
0x2673   :  { %2174 = vrot.lane.b32.xlu1 %v3145_v21, %s3216_s11  ;;  %v3147_v28 = vpop.eup %3146 }
0x2674   :  { %v2163_v29 = vadd.f32 1.0, %v3147_v28  ;;  %v3149_v34 = vpop.eup %3148 }
0x2675   :  { %v2162_v8 = vadd.f32 1.0, %v3149_v34  ;;  %v2827_v34 = vld [vmem:[%s4012_s1 + $0x7] ss:$0 sm:$0xff] }
0x2676   :  { %3150 = vrcp.f32 %v2163_v29 }
0x2677   :  { %3152 = vrcp.f32 %v2162_v8 }
0x2680   :  { %v3151_v25 = vpop.eup %3150 }
0x2681   :  { %v3153_v36 = vpop.eup %3152  ;;  %v2171_v41 = vmul.f32 %v3151_v25, %v3792_v27  ;;  %v2952_v27 = vld [vmem:[%s4014_s3 + $0x1c4] ss:$8 sps:$4 sm:$0xff]  }
0x2682   :  { %v2170_v45 = vmul.f32 %v3153_v36, %v3796_v30  ;;  %2277 = vmatprep.subr.bf16.mxu1 %v2952_v27  ;;  %v2953_v30 = vld [vmem:[%s4014_s3 + $0x1d0] ss:$8 sps:$4 sm:$0xff]  }
0x2683   :  { %2278 = vmatpush1.bf16.msra.mxu1 %v2950_v47 }
0x2684   :  { %2279 = vmatprep.subr.bf16.mxu1 %v2955_v48 }
0x2687   :  { %2280 = vmatpush1.bf16.msra.mxu1 %v2953_v30 }
0x2688   :  { %2281 = vmatprep.subr.bf16.mxu1 %v2958_v50 }
0x268b   :  { %2282 = vmatpush1.bf16.msra.mxu1 %v2956_v53 }
0x268c   :  { %2283 = vmatprep.subr.bf16.mxu1 %v2961_v55 }
0x268f   :  { %2284 = vmatpush1.bf16.msra.mxu1 %v2959_v33 }
0x26e1   :  { %v2177_v35 = vpop.permute.xlu1 %2176 }
0x26e2   :  { %v2181_v13 = vmul.f32 %v3151_v25, %v2177_v35 }
0x26e4   :  { %2186 = vrot.lane.b32.xlu1 %v2181_v13, %s3217_s12 }
0x26e5   :  { %v2175_v37 = vpop.permute.xlu1 %2174 }
0x26e6   :  { %v2180_v19 = vmul.f32 %v3153_v36, %v2175_v37 }
0x26e8   :  { %2184 = vrot.lane.b32.xlu0 %v2180_v19, %s3217_s12 }
0x2756   :  { %v2187_v43 = vpop.permute.xlu1 %2186 }
0x2757   :  { %v3876_v20 = vadd.f32 %v2187_v43, %v2171_v41 }
0x2759   :  { %3154 = vtanh.f32 %v3876_v20  ;;  %v2211_v2 = vrot.slane %v3876_v20, 7 }
0x275a   :  { %v2185_v46 = vpop.permute.xlu0 %2184 }
0x275b   :  { %v3880_v4 = vadd.f32 %v2185_v46, %v2170_v45 }
0x275d   :  { %3156 = vtanh.f32 %v3880_v4  ;;  %v2212_v49 = vsel %vm191_vm0, %v2211_v2, %v3880_v4 }
0x2763   :  { %v3155_v51 = vpop.eup %3154 }
0x2764   :  { %2198 = vrot.lane.b32.xlu1 %v3155_v51, %s3216_s11 }
0x2767   :  { %v3157_v58 = vpop.eup %3156 }
0x2768   :  { %2196 = vrot.lane.b32.xlu1 %v3157_v58, %s3216_s11 }
0x276c   :  { %2213 = vrot.lane.b32.xlu1 %v2212_v49, %s3218_s27 }
0x27d6   :  { %v2199_v59 = vpop.permute.xlu1 %2198 }
0x27d7   :  { %v2203_v60 = vmul.f32 %v3151_v25, %v2199_v59 }
0x27d9   :  { %v2218_v63 = vrot.slane %v2203_v60, 7 }
0x27da   :  { %v2197_v61 = vpop.permute.xlu1 %2196 }
0x27db   :  { %v2202_v40 = vmul.f32 %v3153_v36, %v2197_v61 }
0x27dd   :  { %v3914_v54 = vsel %vm191_vm0, %v2218_v63, %v2202_v40 }
0x27de   :  { %2220 = vrot.lane.b32.xlu1 %v3914_v54, %s3216_s11  ;;  %v2214_v57 = vpop.permute.xlu1 %2213 }
0x2850   :  { %v2221_v1 = vpop.permute.xlu1 %2220 }
0x2851   :  { %v2223_v5 = vsel %vm356_vm2, %v2214_v57, %v2221_v1 }
0x2852   :  { %v2224_v52 = vpack.c.bf16 %v2223_v5, %v2223_v5 }
0x2854   :  { %2826 = vmatmul.mubr.msk.bf16.vlgmr.msra.gmra.mrb[12].mxu1 %vm85_vm3, %v2224_v52 }
0x2927   :  { %v2311_v6 = vpop.f32.mrb[12].mxu1 }
0x2928   :  { %v2325_v62 = vrot.slane %v2311_v6, %v3297_v15  ;;  %v3921_v11 = vpop.f32.mrb[13].mxu1 }
0x2929   :  { %v2315_v12 = vpop.f32.mrb[14].mxu1 }
0x292a   :  { %v2326_v7 = vcombine.high %v2325_v62, %v2325_v62  ;;  %v2333_v14 = vrot.slane %v2325_v62, %v3297_v15  ;;  %v2316_v0 = vpop.f32.mrb[15].mxu1 }
0x292c   :  { %v2340_v3 = vrot.slane %v2326_v7, %v3297_v15  ;;  %v2344_v21 = vrot.slane %v2333_v14, %v3300_v18 }
0x292e   :  { %v2348_v23 = vrot.slane %v2340_v3, %v3300_v18  ;;  %v2351_v28 = vadd.f32 %v2807_v16, %v2344_v21  ;;  %v2460_v3 = vrot.slane %v3921_v11, 1 }
0x2930   :  { %v2352_v29 = vadd.f32 %v2808_v22, %v2348_v23  ;;  %3158 = vtanh.f32 %v2351_v28 }
0x2932   :  { %3160 = vtanh.f32 %v2352_v29 }
0x293a   :  { %v3159_v8 = vpop.eup %3158 }
0x293b   :  { %v2361_v25 = vmul.f32 %v3159_v8, %v2827_v34 }
0x293c   :  { %v3161_v35 = vpop.eup %3160 }
0x293d   :  { %2363 = vadd.xlane.f32.xlu1 %v2361_v25  ;;  %v2362_v15 = vmul.f32 %v3161_v35, %v2827_v34 }
0x293f   :  { %2365 = vadd.xlane.f32.xlu0 %v2362_v15 }
0x29ca   :  { %v2364_v13 = vpop.xlane.xlu1 %2363 }
0x29cb   :  { %v2372_v37 = vrot.slane %v2364_v13, %v3317_v38 }
0x29cc   :  { %v2366_v36 = vpop.xlane.xlu0 %2365 }
0x29cd   :  { %v2376_v19 = vrot.slane %v2366_v36, %v3317_v38 }
0x29cf   :  { %v2377_v41 = vsel %vm191_vm0, %v2376_v19, %v2372_v37 }
0x29d0   :  { %v2379_v43 = vsel %vm194_vm1, %v2377_v41, -inf }
0x29d1   :  { %2380 = vmax.xlane.f32.xlu1 %v2379_v43 }
0x2a5e   :  { %v2381_v45 = vpop.xlane.xlu1 %2380 }
0x2a5f   :  { %v2386_v46 = vrot.slane %v2381_v45, %v3300_v18  ;;  %v2390_v47 = vrot.slane %v2381_v45, %v3323_v44 }
0x2a61   :  { %v2393_v27 = vsub.f32 %v2364_v13, %v2386_v46  ;;  %v2394_v48 = vsub.f32 %v2366_v36, %v2390_v47 }
0x2a63   :  { %v2395_v30 = vmul.f32 1.442695, %v2393_v27  ;;  %v2397_v50 = vmul.f32 1.442695, %v2394_v48 }
0x2a65   :  { %3162 = vpow2.f32 %v2395_v30 }
0x2a66   :  { %3164 = vpow2.f32 %v2397_v50 }
0x2a6f   :  { %v3163_v51 = vpop.eup %3162 }
0x2a70   :  { %v3165_v53 = vpop.eup %3164  ;;  %2402 = vperm.xlu0 %2865, %v3163_v51  }
0x2a71   :  { %2405 = vperm.xlu1 %2864, %v3165_v53  }
0x2aef   :  { %v2403_v55 = vpop.permute.xlu0 %2402 }
0x2af0   :  { %v2406_v58 = vpop.permute.xlu1 %2405  ;;  %v2410_v2 = vrot.slane %v2403_v55, %v3317_v38 }
0x2af1   :  { %v2414_v33 = vrot.slane %v2406_v58, %v3317_v38  ;;  %v2552_v58 = vld [vmem:[%s4016_s5] sm:$0xff] }
0x2af3   :  { %v2415_v49 = vsel %vm191_vm0, %v2414_v33, %v2410_v2  ;;  %v2555_v33 = vld [vmem:[%s4016_s5 + $0x18] sm:$0xff] }
0x2af4   :  { %v2417_v59 = vsel %vm194_vm1, %v2415_v49, 0.0  ;;  %v3220_v49 = vmov 0.0  }
0x2af5   :  { %2418 = vadd.xlane.f32.xlu1 %v2417_v59  ;;  %2846 = vmatprep.mubr.msk.f32.mxu0 %vm3219_vm4, %v3220_v49 }
0x2b06   :  { %2515 = vrot.lane.b32.xlu1 %v3395_v10, %s3217_s12 }
0x2b82   :  { %v2419_v60 = vpop.xlane.xlu1 %2418 }
0x2b83   :  { %v2428_v61 = vrot.slane %v2419_v60, %v3323_v44  ;;  %v2424_v63 = vrot.slane %v2419_v60, %v3300_v18 }
0x2b85   :  { %3166 = vrcp.f32 %v2428_v61 }
0x2b86   :  { %3168 = vrcp.f32 %v2424_v63 }
0x2b8f   :  { %v3167_v40 = vpop.eup %3166 }
0x2b90   :  { %v2434_v57 = vmul.f32 %v3167_v40, %v3165_v53  ;;  %v3169_v1 = vpop.eup %3168 }
0x2b91   :  { %v2432_v38 = vmul.f32 %v3169_v1, %v3163_v51 }
0x2b92   :  { %2442 = vperm.xlu0 %2865, %v2434_v57  }
0x2b96   :  { %2437 = vperm.xlu0 %2865, %v2432_v38  }
0x2c11   :  { %v2443_v5 = vpop.permute.xlu0 %2442 }
0x2c12   :  { %v2446_v52 = vmul.f32 %v3685_v32, %v2443_v5  ;;  %v2516_v5 = vpop.permute.xlu1 %2515 }
0x2c14   :  { %v2453_v6 = vrot.slane %v2446_v52, 4 }
0x2c15   :  { %v2438_v62 = vpop.permute.xlu0 %2437 }
0x2c16   :  { %v2454_v12 = vadd.f32 %v2453_v6, %v2446_v52  ;;  %v2445_v10 = vmul.f32 %v3691_v39, %v2438_v62  ;;  %v2533_v6 = vsel %vm356_vm2, %v2516_v5, %v3480_v17  ;;  %v2831_v17 = vld [vmem:[%s4017_s6] ss:$0 sm:$0xff] }
0x2c18   :  { %v2455_v7 = vrot.slane %v2454_v12, 2  ;;  %v2447_v44 = vrot.slane %v2445_v10, 4 }
0x2c1a   :  { %v2456_v14 = vadd.f32 %v2455_v7, %v2454_v12  ;;  %v2448_v18 = vadd.f32 %v2447_v44, %v2445_v10 }
0x2c1c   :  { %v2457_v0 = vrot.slane %v2456_v14, 1  ;;  %v2449_v16 = vrot.slane %v2448_v18, 2 }
0x2c1e   :  { %v2458_v21 = vadd.f32 %v2457_v0, %v2456_v14  ;;  %v2450_v22 = vadd.f32 %v2449_v16, %v2448_v18 }
0x2c20   :  { %v2464_v23 = vadd.f32 %v2460_v3, %v2458_v21  ;;  %v2451_v28 = vrot.slane %v2450_v22, 1 }
0x2c22   :  { %v2466_v29 = vadd.f32 %v3698_v26, %v2464_v23  ;;  %v2452_v32 = vadd.f32 %v2451_v28, %v2450_v22 }
0x2c24   :  { %3170 = vtanh.f32 %v2466_v29  ;;  %v2463_v34 = vadd.f32 %v2452_v32, %v3921_v11  ;;  %v2829_v35 = vmul.f32 -1.442695, %v2466_v29 }
0x2c26   :  { %v2465_v39 = vadd.f32 %v3698_v26, %v2463_v34 }
0x2c28   :  { %3172 = vtanh.f32 %v2465_v39  ;;  %v2828_v15 = vmul.f32 -1.442695, %v2465_v39 }
0x2c29   :  { %3174 = vpow2.f32 %v2829_v35 }
0x2c2a   :  { %3176 = vpow2.f32 %v2828_v15 }
0x2c2e   :  { %v3171_v8 = vpop.eup %3170 }
0x2c2f   :  { %2487 = vrot.lane.b32.xlu0 %v3171_v8, %s3216_s11 }
0x2c32   :  { %v3173_v25 = vpop.eup %3172 }
0x2c33   :  { %2485 = vrot.lane.b32.xlu0 %v3173_v25, %s3216_s11  ;;  %v3175_v13 = vpop.eup %3174 }
0x2c34   :  { %v2474_v36 = vadd.f32 1.0, %v3175_v13  ;;  %v3177_v37 = vpop.eup %3176 }
0x2c35   :  { %v2473_v19 = vadd.f32 1.0, %v3177_v37 }
0x2c36   :  { %3178 = vrcp.f32 %v2474_v36 }
0x2c37   :  { %3180 = vrcp.f32 %v2473_v19 }
0x2c40   :  { %v3179_v11 = vpop.eup %3178 }
0x2c41   :  { %v3181_v43 = vpop.eup %3180  ;;  %v2482_v47 = vmul.f32 %v3179_v11, %v3876_v20  ;;  %v2553_v20 = vld [vmem:[%s4016_s5 + $0x8] sm:$0xff] }
0x2c42   :  { %v2481_v30 = vmul.f32 %v3181_v43, %v3880_v4  ;;  %v2554_v4 = vld [vmem:[%s4016_s5 + $0x10] sm:$0xff]  ;;  %v2850_v2 = vpack.c.bf16 %v2553_v20, %v2552_v58 }
0x2c43   :  { %v2853_v59 = vpack.c.bf16 %v2555_v33, %v2554_v4 }
0x2c44   :  { %2851 = vmatpush3.bf16.msra.mxu0 %v2850_v2 }
0x2c45   :  { %2852 = vmatprep.subr.bf16.mxu0 %v3214_v9 }
0x2c48   :  { %2854 = vmatpush3.bf16.msra.mxu0 %v2853_v59 }
0x2ca1   :  { %v2488_v41 = vpop.permute.xlu0 %2487 }
0x2ca2   :  { %v2492_v26 = vmul.f32 %v3179_v11, %v2488_v41 }
0x2ca4   :  { %2497 = vrot.lane.b32.xlu0 %v2492_v26, %s3217_s12 }
0x2ca5   :  { %v2486_v45 = vpop.permute.xlu0 %2485 }
0x2ca6   :  { %v2491_v46 = vmul.f32 %v3181_v43, %v2486_v45 }
0x2ca8   :  { %2495 = vrot.lane.b32.xlu0 %v2491_v46, %s3217_s12 }
0x2d16   :  { %v2498_v27 = vpop.permute.xlu0 %2497 }
0x2d17   :  { %v2502_v48 = vadd.f32 %v2498_v27, %v2482_v47 }
0x2d19   :  { %3182 = vtanh.f32 %v2502_v48 }
0x2d1a   :  { %v2496_v50 = vpop.permute.xlu0 %2495 }
0x2d1b   :  { %v2501_v51 = vadd.f32 %v2496_v50, %v2481_v30 }
0x2d1d   :  { %3184 = vtanh.f32 %v2501_v51 }
0x2d23   :  { %v3183_v53 = vpop.eup %3182 }
0x2d24   :  { %2509 = vrot.lane.b32.xlu0 %v3183_v53, %s3216_s11 }
0x2d27   :  { %v3185_v55 = vpop.eup %3184 }
0x2d28   :  { %2507 = vrot.lane.b32.xlu0 %v3185_v55, %s3216_s11 }
0x2d96   :  { %v2510_v60 = vpop.permute.xlu0 %2509 }
0x2d97   :  { %v2514_v61 = vmul.f32 %v3179_v11, %v2510_v60 }
0x2d99   :  { %v2530_v40 = vrot.slane %v2514_v61, 7 }
0x2d9a   :  { %v2508_v63 = vpop.permute.xlu0 %2507 }
0x2d9b   :  { %v2513_v57 = vmul.f32 %v3181_v43, %v2508_v63 }
0x2d9d   :  { %v2531_v1 = vsel %vm191_vm0, %v2530_v40, %v2513_v57 }
0x2d9e   :  { %2563 = vrot.lane.b32.xlu0 %v2531_v1, %s3217_s12 }
0x2da2   :  { %2522 = vrot.lane.b32.xlu0 %v3746_v42, %s3217_s12 }
0x2da6   :  { %2518 = vrot.lane.b32.xlu0 %v3563_v24, %s3218_s27 }
0x2daa   :  { %2525 = vrot.lane.b32.xlu0 %v3914_v54, %s3218_s27 }
0x2e10   :  { %v2564_v9 = vpop.permute.xlu0 %2563 }
0x2e11   :  { %2847 = vmatmul.mubr.msk.f32.vlgmr.msra.gmra.mrb[16].mxu0 %vm356_vm2, %v2564_v9 }
0x2e14   :  { %v2523_v38 = vpop.permute.xlu0 %2522 }
0x2e15   :  { %v2537_v42 = vsel %vm356_vm2, %v2523_v38, %v3832_v56 }
0x2e18   :  { %v2519_v52 = vpop.permute.xlu0 %2518 }
0x2e19   :  { %v2534_v62 = vsel %vm85_vm3, %v2533_v6, %v2519_v52 }
0x2e1a   :  { %v2536_v54 = vsel %vm2535_vm5, %v2534_v62, %v3647_v31 }
0x2e1c   :  { %v2526_v12 = vpop.permute.xlu0 %2525 }
0x2e1d   :  { %v2538_v24 = vsel %vm85_vm3, %v2537_v42, %v2526_v12 }
0x2e1e   :  { %v2539_v10 = vsel %vm2535_vm5, %v2538_v24, %v2531_v1 }
0x2e1f   :  { %v2542_v7 = vcombine.low %v2536_v54, %v2539_v10 }
0x2e21   :  { %2830 = vst.sshfl [vmem:[%s4019_s8] sm:$0x33 pattern:$0x76325410] %v2542_v7 }
0x2ee4   :  { %v2633_v44 = vpop.f32.mrb[16].mxu0 }
0x2ee5   :  { %v2634_v56 = vadd.f32 %v2831_v17, %v2633_v44  ;;  %v2848_v14 = vpop.f32.mrb[17].mxu0 }
0x2ee7   :  { %2638 = vst.msk [vmem:[#allocation2] sm:$0x3] %vm2637_vm6, %v2634_v56 }
0x2ee8   :  { %3200 = shalt.err (!%p3197_p4)
}
0x2ee9   :  { %s3201_s22 = scalar_lea.hbm %s4018_s7, 32 }
0x2eea   :  { %p3202_p5 = scmp.ne.s32.totalorder %s4018_s7, %s3201_s22  ;;  %p3205_p6 = scmp.lt.u32.totalorder %s3201_s22, %s4018_s7 }
0x2eec   :  { %p3207_p7 = pnand %p3205_p6, %p3202_p5 }
0x2eee   :  { %3210 = shalt.err (!%p3207_p7)
}
0x2eef   :  { %2648 = dma.vmem_to_hbm [thread:$0]  %s2646_s19, 32, %s4018_s7, [#allocation3]  }
0x2ef0   :  { %3211 = dma.done.wait [#allocation3], 32  }
0x2ef1   :  { %3212 = vsyncadd [#allocation3], 4294967264 }
0x2ef2   :  { %2656 = vsyncpa [#allocation3], 1 }

</bundles_post_ra>
